<compile_context>
chip_gen: v5e
topology: v5e:2x2
jax: 0.10.0
libtpu: 0.0.40
codegen_flags: <defaults>
</compile_context>

<pallas_src>
import functools

import jax
import jax.numpy as jnp
from jax.experimental import pallas as pl
from jax.experimental.pallas import tpu as pltpu

EPS = 1e-5
_PAD = 8  # W-axis halo over-allocation so the interior write is sublane-aligned


# ----------------------------------------------------------------------------
# Fused bottleneck kernel: one image (NHWC, flattened to (H*W, C)) per step.
# ----------------------------------------------------------------------------
def _bottleneck_kernel(
    x_ref,        # (1, H*W, Cin)   bf16   input (also the residual)
    w1_ref,       # (Cin, P)        bf16
    w2_ref,       # (9*P, P)        bf16   3x3 weights, rows ordered (dy, dx, cin)
    w3_ref,       # (P, Cout)       bf16
    sb_ref,       # (6, Cout)       f32    [s1, b1, s2, b2, s3, b3] (rows 0-3 padded past P)
    o_ref,        # (1, H*W, Cout)  bf16
    xp_ref,       # VMEM scratch (H+2, W+2*_PAD, P) bf16: zero-haloed conv1 output
    *, H, W, P, use_im2col,
):
    x = x_ref[0]                                           # (H*W, Cin) bf16
    Wp = W + 2 * _PAD

    s1 = sb_ref[0:1, :P]
    b1 = sb_ref[1:2, :P]
    s2 = sb_ref[2:3, :P]
    b2 = sb_ref[3:4, :P]
    s3 = sb_ref[4:5, :]
    b3 = sb_ref[5:6, :]

    # ---- conv1 (1x1) + bn1 + relu  (bf16 MXU inputs, f32 accumulation) ----
    h1 = jnp.dot(x, w1_ref[...], preferred_element_type=jnp.float32)
    h1 = jnp.maximum(h1 * s1 + b1, 0.0)                    # (H*W, P) f32

    # ---- zero only the halo strips the 3x3 taps read (megacore-safe) ----
    xp_ref[0:1, :, :] = jnp.zeros((1, Wp, P), jnp.bfloat16)
    xp_ref[H + 1:H + 2, :, :] = jnp.zeros((1, Wp, P), jnp.bfloat16)
    xp_ref[1:H + 1, 0:_PAD, :] = jnp.zeros((H, _PAD, P), jnp.bfloat16)
    xp_ref[1:H + 1, _PAD + W:Wp, :] = jnp.zeros((H, _PAD, P), jnp.bfloat16)

    # ---- sublane-aligned interior write, single f32->bf16 cast of h1 ----
    xp_ref[1:H + 1, _PAD:_PAD + W, :] = h1.astype(jnp.bfloat16).reshape(H, W, P)
    xp = xp_ref[...]                                       # (H+2, Wp, P) bf16

    def tap(dy, dx):
        off = _PAD - 1 + dx                                # column offsets 7 / 8 / 9
        return xp[dy:dy + H, off:off + W, :].reshape(H * W, P)

    # ---- conv2 (3x3, pad=1) + bn2 + relu ----
    if use_im2col:
        # Tiny P: one K=9P matmul feeds the MXU better than nine K=P matmuls.
        patches = jnp.concatenate(
            [tap(dy, dx) for dy in range(3) for dx in range(3)], axis=-1)
        h2 = jnp.dot(patches, w2_ref[...], preferred_element_type=jnp.float32)
    else:
        # P >= 128: accumulate nine matmuls; no (H*W, 9P) im2col materialization.
        h2 = jnp.zeros((H * W, P), jnp.float32)
        for dy in range(3):
            for dx in range(3):
                t = dy * 3 + dx
                h2 = h2 + jnp.dot(tap(dy, dx),
                                  w2_ref[t * P:(t + 1) * P, :],
                                  preferred_element_type=jnp.float32)
    h2 = jnp.maximum(h2 * s2 + b2, 0.0)                    # (H*W, P) f32

    # ---- conv3 (1x1) + bn3 + residual + relu, emitted in bf16 ----
    y = jnp.dot(h2.astype(jnp.bfloat16), w3_ref[...],
                preferred_element_type=jnp.float32)
    y = jnp.maximum(y * s3 + b3 + x.astype(jnp.float32), 0.0)
    o_ref[0] = y.astype(jnp.bfloat16)


# ----------------------------------------------------------------------------
# BN folding + parameter init (deterministic)
# ----------------------------------------------------------------------------
def fold_bn(gamma, beta, mean, var):
    scale = gamma / jnp.sqrt(var + EPS)
    bias = beta - mean * scale
    return scale.astype(jnp.float32), bias.astype(jnp.float32)


def init_params(key, inplanes, planes):
    ks = jax.random.split(key, 15)
    exp = 4
    return {
        "w1": jax.random.normal(ks[0], (inplanes, planes), jnp.float32) * 0.1,
        "g1": 1.0 + 0.1 * jax.random.normal(ks[1], (planes,), jnp.float32),
        "b1": 0.1 * jax.random.normal(ks[2], (planes,), jnp.float32),
        "m1": 0.1 * jax.random.normal(ks[3], (planes,), jnp.float32),
        "v1": 0.5 + jax.random.uniform(ks[4], (planes,), jnp.float32),
        "w2": jax.random.normal(ks[5], (3, 3, planes, planes), jnp.float32) * 0.1,
        "g2": 1.0 + 0.1 * jax.random.normal(ks[6], (planes,), jnp.float32),
        "b2": 0.1 * jax.random.normal(ks[7], (planes,), jnp.float32),
        "m2": 0.1 * jax.random.normal(ks[8], (planes,), jnp.float32),
        "v2": 0.5 + jax.random.uniform(ks[9], (planes,), jnp.float32),
        "w3": jax.random.normal(ks[10], (planes, planes * exp), jnp.float32) * 0.1,
        "g3": 1.0 + 0.1 * jax.random.normal(ks[11], (planes * exp,), jnp.float32),
        "b3": 0.1 * jax.random.normal(ks[12], (planes * exp,), jnp.float32),
        "m3": 0.1 * jax.random.normal(ks[13], (planes * exp,), jnp.float32),
        "v3": 0.5 + jax.random.uniform(ks[14], (planes * exp,), jnp.float32),
    }


# ----------------------------------------------------------------------------
# Forward pass (NHWC-native; thin NCHW wrapper below for PyTorch API parity)
# ----------------------------------------------------------------------------
def bottleneck_forward_nhwc(x_nhwc, p):
    n, h, w, cin = x_nhwc.shape
    planes = p["w1"].shape[1]
    cout = p["w3"].shape[1]
    assert cin == cout == 4 * planes, (
        "no-downsample path requires inplanes == planes * expansion")

    s1, b1 = fold_bn(p["g1"], p["b1"], p["m1"], p["v1"])
    s2, b2 = fold_bn(p["g2"], p["b2"], p["m2"], p["v2"])
    s3, b3 = fold_bn(p["g3"], p["b3"], p["m3"], p["v3"])

    def pad_c(v):
        return jnp.pad(v, (0, cout - v.shape[0]))

    # One packed BN scale/bias operand instead of six tiny ones.
    sb = jnp.stack([pad_c(s1), pad_c(b1), pad_c(s2), pad_c(b2), s3, b3], axis=0)
    sb = sb.astype(jnp.float32)                            # (6, cout)

    # HBM-resident matmul operands in bf16 (halves HBM traffic, MXU-native).
    x2 = x_nhwc.reshape(n, h * w, cin).astype(jnp.bfloat16)
    w1 = p["w1"].astype(jnp.bfloat16)
    w2 = p["w2"].reshape(9 * planes, planes).astype(jnp.bfloat16)  # (dy,dx,cin)
    w3 = p["w3"].astype(jnp.bfloat16)

    use_im2col = planes < 128      # tiny-P path only; P>=128 uses 9 accumulated matmuls

    kernel = functools.partial(_bottleneck_kernel, H=h, W=w, P=planes,
                               use_im2col=use_im2col)

    # Rough working-set estimate -> VMEM limit (clamped; v5e/v6e have 128 MiB
    # physical VMEM, so keep whole-image blocks and raise the limit rather
    # than shrinking tiles).  TODO(synk): row-tile + <=48 MiB on v7x.
    est = 2 * (h * w * cin * 2) + 2 * (h * w * cout * 2)                 # in/out, double-buffered
    est += (cin * planes + 9 * planes * planes + planes * cout) * 2      # weights
    est += 6 * cout * 4                                                  # packed BN params
    est += (h + 2) * (w + 2 * _PAD) * planes * 2                         # halo scratch (bf16)
    est += h * w * planes * 4 * (12 if use_im2col else 4)                # f32 temporaries headroom
    vmem_limit = int(min(96 * 1024 * 1024, max(32 * 1024 * 1024, 2 * est)))

    out = pl.pallas_call(
        kernel,
        out_shape=jax.ShapeDtypeStruct((n, h * w, cout), jnp.bfloat16),
        grid=(n,),
        in_specs=[
            pl.BlockSpec((1, h * w, cin), lambda b: (b, 0, 0)),
            pl.BlockSpec((cin, planes), lambda b: (0, 0)),
            pl.BlockSpec((9 * planes, planes), lambda b: (0, 0)),
            pl.BlockSpec((planes, cout), lambda b: (0, 0)),
            pl.BlockSpec((6, cout), lambda b: (0, 0)),
        ],
        out_specs=pl.BlockSpec((1, h * w, cout), lambda b: (b, 0, 0)),
        scratch_shapes=[pltpu.VMEM((h + 2, w + 2 * _PAD, planes), jnp.bfloat16)],
        compiler_params=pltpu.CompilerParams(
            dimension_semantics=("parallel",),
            vmem_limit_bytes=vmem_limit,
        ),
    )(x2, w1, w2, w3, sb)
    return out.reshape(n, h, w, cout)


def bottleneck_forward(x_nchw, p):
    # NCHW<->NHWC boundary transposes kept only for PyTorch API parity.
    x = jnp.transpose(x_nchw, (0, 2, 3, 1))
    out = bottleneck_forward_nhwc(x, p)
    return jnp.transpose(out, (0, 3, 1, 2))


# ----------------------------------------------------------------------------
# Pure-JAX reference with the same precision policy (bf16 MXU inputs,
# f32 accumulation, bf16 output) for a tight correctness check.
# ----------------------------------------------------------------------------
def bottleneck_ref(x_nchw, p):
    def bn(y, g, b, m, v):
        return (y - m) / jnp.sqrt(v + EPS) * g + b

    f32 = jnp.float32
    bf16 = jnp.bfloat16
    x = jnp.transpose(x_nchw, (0, 2, 3, 1))
    xb = x.astype(bf16)

    out = jnp.einsum("nhwc,cd->nhwd", xb, p["w1"].astype(bf16),
                     preferred_element_type=f32)
    out = jax.nn.relu(bn(out, p["g1"], p["b1"], p["m1"], p["v1"]))
    out = jax.lax.conv_general_dilated(
        out.astype(bf16), p["w2"].astype(bf16), (1, 1), ((1, 1), (1, 1)),
        dimension_numbers=("NHWC", "HWIO", "NHWC"),
        preferred_element_type=f32)
    out = jax.nn.relu(bn(out, p["g2"], p["b2"], p["m2"], p["v2"]))
    out = jnp.einsum("nhwc,cd->nhwd", out.astype(bf16), p["w3"].astype(bf16),
                     preferred_element_type=f32)
    out = bn(out, p["g3"], p["b3"], p["m3"], p["v3"]) + xb.astype(f32)
    out = jax.nn.relu(out)
    return jnp.transpose(out, (0, 3, 1, 2)).astype(bf16)


if __name__ == "__main__":
    key = jax.random.PRNGKey(0)

    configs = [
        # (planes, N, H, W): small-channel config -> im2col conv2 path
        (8, 2, 16, 16),
        # channel-rich config -> nine-accumulated-matmul conv2 path (P >= 128)
        (128, 1, 8, 8),
    ]
    for planes, n, h, w in configs:
        key, kx, kp = jax.random.split(key, 3)
        inplanes = planes * 4          # residual add requires inplanes == planes*4
        x = jax.random.normal(kx, (n, inplanes, h, w), jnp.float32)   # NCHW input
        params = init_params(kp, inplanes, planes)

        out = jax.block_until_ready(bottleneck_forward(x, params))
        ref = jax.block_until_ready(bottleneck_ref(x, params))

        assert out.shape == (n, inplanes, h, w)
        o32 = out.astype(jnp.float32)
        r32 = ref.astype(jnp.float32)
        max_err = float(jnp.max(jnp.abs(o32 - r32)))
        assert jnp.allclose(o32, r32, atol=2e-2, rtol=2e-2), (planes, max_err)

    print("KERNEL_OK")
</pallas_src>

<mosaic_0001>
module attributes {stable_mosaic.version = 11 : i64} {
  func.func @_bottleneck_kernel(%arg0: i32, %arg1: memref<1x256x32xbf16, #tpu.memory_space<vmem>>, %arg2: memref<32x8xbf16, #tpu.memory_space<vmem>>, %arg3: memref<72x8xbf16, #tpu.memory_space<vmem>>, %arg4: memref<8x32xbf16, #tpu.memory_space<vmem>>, %arg5: memref<6x32xf32, #tpu.memory_space<vmem>>, %arg6: memref<1x256x32xbf16, #tpu.memory_space<vmem>>, %arg7: memref<18x32x8xbf16, #tpu.memory_space<vmem>>) attributes {dimension_semantics = [#tpu.dimension_semantics<parallel>], iteration_bounds = array<i64: 2>, scalar_prefetch = 0 : i64, scratch_operands = 1 : i64, tpu.core_type = #tpu.core_type<tc>, window_params = [{transform_indices = @transform_0, window_bounds = array<i64: 1, 256, 32>}, {pipeline_mode = #tpu.pipeline_mode<synchronous>, transform_indices = @transform_1, window_bounds = array<i64: 32, 8>}, {pipeline_mode = #tpu.pipeline_mode<synchronous>, transform_indices = @transform_2, window_bounds = array<i64: 72, 8>}, {pipeline_mode = #tpu.pipeline_mode<synchronous>, transform_indices = @transform_3, window_bounds = array<i64: 8, 32>}, {pipeline_mode = #tpu.pipeline_mode<synchronous>, transform_indices = @transform_4, window_bounds = array<i64: 6, 32>}, {transform_indices = @transform_5, window_bounds = array<i64: 1, 256, 32>}]} {
    %c0 = arith.constant 0 : index
    %c0_0 = arith.constant 0 : index
    %c0_1 = arith.constant 0 : index
    %0 = vector.load %arg1[%c0, %c0_0, %c0_1] : memref<1x256x32xbf16, #tpu.memory_space<vmem>>, vector<1x256x32xbf16>
    %1 = vector.shape_cast %0 : vector<1x256x32xbf16> to vector<256x32xbf16>
    %c0_2 = arith.constant 0 : index
    %c0_3 = arith.constant 0 : index
    %2 = vector.load %arg5[%c0_2, %c0_3] : memref<6x32xf32, #tpu.memory_space<vmem>>, vector<1x8xf32>
    %c1 = arith.constant 1 : index
    %c0_4 = arith.constant 0 : index
    %3 = vector.load %arg5[%c1, %c0_4] : memref<6x32xf32, #tpu.memory_space<vmem>>, vector<1x8xf32>
    %c2 = arith.constant 2 : index
    %c0_5 = arith.constant 0 : index
    %4 = vector.load %arg5[%c2, %c0_5] : memref<6x32xf32, #tpu.memory_space<vmem>>, vector<1x8xf32>
    %c3 = arith.constant 3 : index
    %c0_6 = arith.constant 0 : index
    %5 = vector.load %arg5[%c3, %c0_6] : memref<6x32xf32, #tpu.memory_space<vmem>>, vector<1x8xf32>
    %c4 = arith.constant 4 : index
    %c0_7 = arith.constant 0 : index
    %6 = vector.load %arg5[%c4, %c0_7] : memref<6x32xf32, #tpu.memory_space<vmem>>, vector<1x32xf32>
    %c5 = arith.constant 5 : index
    %c0_8 = arith.constant 0 : index
    %7 = vector.load %arg5[%c5, %c0_8] : memref<6x32xf32, #tpu.memory_space<vmem>>, vector<1x32xf32>
    %c0_9 = arith.constant 0 : index
    %c0_10 = arith.constant 0 : index
    %8 = vector.load %arg2[%c0_9, %c0_10] : memref<32x8xbf16, #tpu.memory_space<vmem>>, vector<32x8xbf16>
    %cst = arith.constant dense<0.000000e+00> : vector<256x8xf32>
    %9 = tpu.matmul %1, %8, %cst {dimension_numbers = #tpu.dot_dimension_numbers<[1], [0], [0], [1], [0, 0, 1, 1], [], []>} : vector<256x32xbf16>, vector<32x8xbf16>, vector<256x8xf32> -> vector<256x8xf32>
    %10 = vector.broadcast %2 : vector<1x8xf32> to vector<256x8xf32>
    %11 = arith.mulf %9, %10 : vector<256x8xf32>
    %12 = vector.broadcast %3 : vector<1x8xf32> to vector<256x8xf32>
    %13 = arith.addf %11, %12 : vector<256x8xf32>
    %cst_11 = arith.constant 0.000000e+00 : f32
    %14 = vector.broadcast %cst_11 : f32 to vector<256x8xf32>
    %15 = arith.maximumf %13, %14 : vector<256x8xf32>
    %cst_12 = arith.constant 0.000000e+00 : bf16
    %16 = vector.broadcast %cst_12 : bf16 to vector<1x32x8xbf16>
    %c0_13 = arith.constant 0 : index
    %c0_14 = arith.constant 0 : index
    %c0_15 = arith.constant 0 : index
    %17 = vector.load %arg7[%c0_13, %c0_14, %c0_15] : memref<18x32x8xbf16, #tpu.memory_space<vmem>>, vector<1x32x8xbf16>
    tpu.vector_store %arg7[%c0_13, %c0_14, %c0_15], %16 {strides = array<i32>} : memref<18x32x8xbf16, #tpu.memory_space<vmem>>, vector<1x32x8xbf16>,
    %cst_16 = arith.constant 0.000000e+00 : bf16
    %18 = vector.broadcast %cst_16 : bf16 to vector<1x32x8xbf16>
    %c17 = arith.constant 17 : index
    %c0_17 = arith.constant 0 : index
    %c0_18 = arith.constant 0 : index
    %19 = vector.load %arg7[%c17, %c0_17, %c0_18] : memref<18x32x8xbf16, #tpu.memory_space<vmem>>, vector<1x32x8xbf16>
    tpu.vector_store %arg7[%c17, %c0_17, %c0_18], %18 {strides = array<i32>} : memref<18x32x8xbf16, #tpu.memory_space<vmem>>, vector<1x32x8xbf16>,
    %cst_19 = arith.constant 0.000000e+00 : bf16
    %20 = vector.broadcast %cst_19 : bf16 to vector<16x8x8xbf16>
    %c1_20 = arith.constant 1 : index
    %c0_21 = arith.constant 0 : index
    %c0_22 = arith.constant 0 : index
    %21 = vector.load %arg7[%c1_20, %c0_21, %c0_22] : memref<18x32x8xbf16, #tpu.memory_space<vmem>>, vector<16x8x8xbf16>
    tpu.vector_store %arg7[%c1_20, %c0_21, %c0_22], %20 {strides = array<i32>} : memref<18x32x8xbf16, #tpu.memory_space<vmem>>, vector<16x8x8xbf16>,
    %cst_23 = arith.constant 0.000000e+00 : bf16
    %22 = vector.broadcast %cst_23 : bf16 to vector<16x8x8xbf16>
    %c1_24 = arith.constant 1 : index
    %c24 = arith.constant 24 : index
    %c0_25 = arith.constant 0 : index
    %23 = vector.load %arg7[%c1_24, %c24, %c0_25] : memref<18x32x8xbf16, #tpu.memory_space<vmem>>, vector<16x8x8xbf16>
    tpu.vector_store %arg7[%c1_24, %c24, %c0_25], %22 {strides = array<i32>} : memref<18x32x8xbf16, #tpu.memory_space<vmem>>, vector<16x8x8xbf16>,
    %24 = arith.truncf %15 : vector<256x8xf32> to vector<256x8xbf16>
    %25 = vector.shape_cast %24 : vector<256x8xbf16> to vector<16x16x8xbf16>
    %c1_26 = arith.constant 1 : index
    %c8 = arith.constant 8 : index
    %c0_27 = arith.constant 0 : index
    %26 = vector.load %arg7[%c1_26, %c8, %c0_27] : memref<18x32x8xbf16, #tpu.memory_space<vmem>>, vector<16x16x8xbf16>
    tpu.vector_store %arg7[%c1_26, %c8, %c0_27], %25 {strides = array<i32>} : memref<18x32x8xbf16, #tpu.memory_space<vmem>>, vector<16x16x8xbf16>,
    %c0_28 = arith.constant 0 : index
    %c0_29 = arith.constant 0 : index
    %c0_30 = arith.constant 0 : index
    %27 = vector.load %arg7[%c0_28, %c0_29, %c0_30] : memref<18x32x8xbf16, #tpu.memory_space<vmem>>, vector<18x32x8xbf16>
    %28 = vector.extract_strided_slice %27 {offsets = [0, 7, 0], sizes = [16, 16, 8], strides = [1, 1, 1]} : vector<18x32x8xbf16> to vector<16x16x8xbf16>
    %29 = vector.shape_cast %28 : vector<16x16x8xbf16> to vector<256x8xbf16>
    %30 = vector.extract_strided_slice %27 {offsets = [0, 8, 0], sizes = [16, 16, 8], strides = [1, 1, 1]} : vector<18x32x8xbf16> to vector<16x16x8xbf16>
    %31 = vector.shape_cast %30 : vector<16x16x8xbf16> to vector<256x8xbf16>
    %32 = vector.extract_strided_slice %27 {offsets = [0, 9, 0], sizes = [16, 16, 8], strides = [1, 1, 1]} : vector<18x32x8xbf16> to vector<16x16x8xbf16>
    %33 = vector.shape_cast %32 : vector<16x16x8xbf16> to vector<256x8xbf16>
    %34 = vector.extract_strided_slice %27 {offsets = [1, 7, 0], sizes = [16, 16, 8], strides = [1, 1, 1]} : vector<18x32x8xbf16> to vector<16x16x8xbf16>
    %35 = vector.shape_cast %34 : vector<16x16x8xbf16> to vector<256x8xbf16>
    %36 = vector.extract_strided_slice %27 {offsets = [1, 8, 0], sizes = [16, 16, 8], strides = [1, 1, 1]} : vector<18x32x8xbf16> to vector<16x16x8xbf16>
    %37 = vector.shape_cast %36 : vector<16x16x8xbf16> to vector<256x8xbf16>
    %38 = vector.extract_strided_slice %27 {offsets = [1, 9, 0], sizes = [16, 16, 8], strides = [1, 1, 1]} : vector<18x32x8xbf16> to vector<16x16x8xbf16>
    %39 = vector.shape_cast %38 : vector<16x16x8xbf16> to vector<256x8xbf16>
    %40 = vector.extract_strided_slice %27 {offsets = [2, 7, 0], sizes = [16, 16, 8], strides = [1, 1, 1]} : vector<18x32x8xbf16> to vector<16x16x8xbf16>
    %41 = vector.shape_cast %40 : vector<16x16x8xbf16> to vector<256x8xbf16>
    %42 = vector.extract_strided_slice %27 {offsets = [2, 8, 0], sizes = [16, 16, 8], strides = [1, 1, 1]} : vector<18x32x8xbf16> to vector<16x16x8xbf16>
    %43 = vector.shape_cast %42 : vector<16x16x8xbf16> to vector<256x8xbf16>
    %44 = vector.extract_strided_slice %27 {offsets = [2, 9, 0], sizes = [16, 16, 8], strides = [1, 1, 1]} : vector<18x32x8xbf16> to vector<16x16x8xbf16>
    %45 = vector.shape_cast %44 : vector<16x16x8xbf16> to vector<256x8xbf16>
    %46 = tpu.concatenate %29, %31, %33, %35, %37, %39, %41, %43, %45 in 1 : vector<256x8xbf16>, vector<256x8xbf16>, vector<256x8xbf16>, vector<256x8xbf16>, vector<256x8xbf16>, vector<256x8xbf16>, vector<256x8xbf16>, vector<256x8xbf16>, vector<256x8xbf16> -> vector<256x72xbf16>
    %c0_31 = arith.constant 0 : index
    %c0_32 = arith.constant 0 : index
    %47 = vector.load %arg3[%c0_31, %c0_32] : memref<72x8xbf16, #tpu.memory_space<vmem>>, vector<72x8xbf16>
    %cst_33 = arith.constant dense<0.000000e+00> : vector<256x8xf32>
    %48 = tpu.matmul %46, %47, %cst_33 {dimension_numbers = #tpu.dot_dimension_numbers<[1], [0], [0], [1], [0, 0, 1, 1], [], []>} : vector<256x72xbf16>, vector<72x8xbf16>, vector<256x8xf32> -> vector<256x8xf32>
    %49 = vector.broadcast %4 : vector<1x8xf32> to vector<256x8xf32>
    %50 = arith.mulf %48, %49 : vector<256x8xf32>
    %51 = vector.broadcast %5 : vector<1x8xf32> to vector<256x8xf32>
    %52 = arith.addf %50, %51 : vector<256x8xf32>
    %cst_34 = arith.constant 0.000000e+00 : f32
    %53 = vector.broadcast %cst_34 : f32 to vector<256x8xf32>
    %54 = arith.maximumf %52, %53 : vector<256x8xf32>
    %55 = arith.truncf %54 : vector<256x8xf32> to vector<256x8xbf16>
    %c0_35 = arith.constant 0 : index
    %c0_36 = arith.constant 0 : index
    %56 = vector.load %arg4[%c0_35, %c0_36] : memref<8x32xbf16, #tpu.memory_space<vmem>>, vector<8x32xbf16>
    %cst_37 = arith.constant dense<0.000000e+00> : vector<256x32xf32>
    %57 = tpu.matmul %55, %56, %cst_37 {dimension_numbers = #tpu.dot_dimension_numbers<[1], [0], [0], [1], [0, 0, 1, 1], [], []>} : vector<256x8xbf16>, vector<8x32xbf16>, vector<256x32xf32> -> vector<256x32xf32>
    %58 = vector.broadcast %6 : vector<1x32xf32> to vector<256x32xf32>
    %59 = arith.mulf %57, %58 : vector<256x32xf32>
    %60 = vector.broadcast %7 : vector<1x32xf32> to vector<256x32xf32>
    %61 = arith.addf %59, %60 : vector<256x32xf32>
    %62 = arith.extf %1 : vector<256x32xbf16> to vector<256x32xf32>
    %63 = arith.addf %61, %62 : vector<256x32xf32>
    %cst_38 = arith.constant 0.000000e+00 : f32
    %64 = vector.broadcast %cst_38 : f32 to vector<256x32xf32>
    %65 = arith.maximumf %63, %64 : vector<256x32xf32>
    %66 = arith.truncf %65 : vector<256x32xf32> to vector<256x32xbf16>
    %c0_39 = arith.constant 0 : index
    %c0_40 = arith.constant 0 : index
    %c0_41 = arith.constant 0 : index
    %67 = vector.load %arg6[%c0_39, %c0_40, %c0_41] : memref<1x256x32xbf16, #tpu.memory_space<vmem>>, vector<1x256x32xbf16>
    %68 = vector.shape_cast %67 : vector<1x256x32xbf16> to vector<256x32xbf16>
    %69 = vector.shape_cast %66 : vector<256x32xbf16> to vector<1x256x32xbf16>
    tpu.vector_store %arg6[%c0_39, %c0_40, %c0_41], %69 {strides = array<i32>} : memref<1x256x32xbf16, #tpu.memory_space<vmem>>, vector<1x256x32xbf16>,
    return
  }
  func.func @transform_0(%arg0: i32) -> (i32, i32, i32) {
    %c0_i32 = arith.constant 0 : i32
    %c0_i32_0 = arith.constant 0 : i32
    %c0_i32_1 = arith.constant 0 : i32
    return %arg0, %c0_i32, %c0_i32_0 : i32, i32, i32
  }
  func.func @transform_1(%arg0: i32) -> (i32, i32) {
    %c0_i32 = arith.constant 0 : i32
    %c0_i32_0 = arith.constant 0 : i32
    %c0_i32_1 = arith.constant 0 : i32
    return %c0_i32, %c0_i32_0 : i32, i32
  }
  func.func @transform_2(%arg0: i32) -> (i32, i32) {
    %c0_i32 = arith.constant 0 : i32
    %c0_i32_0 = arith.constant 0 : i32
    %c0_i32_1 = arith.constant 0 : i32
    return %c0_i32, %c0_i32_0 : i32, i32
  }
  func.func @transform_3(%arg0: i32) -> (i32, i32) {
    %c0_i32 = arith.constant 0 : i32
    %c0_i32_0 = arith.constant 0 : i32
    %c0_i32_1 = arith.constant 0 : i32
    return %c0_i32, %c0_i32_0 : i32, i32
  }
  func.func @transform_4(%arg0: i32) -> (i32, i32) {
    %c0_i32 = arith.constant 0 : i32
    %c0_i32_0 = arith.constant 0 : i32
    %c0_i32_1 = arith.constant 0 : i32
    return %c0_i32, %c0_i32_0 : i32, i32
  }
  func.func @transform_5(%arg0: i32) -> (i32, i32, i32) {
    %c0_i32 = arith.constant 0 : i32
    %c0_i32_0 = arith.constant 0 : i32
    %c0_i32_1 = arith.constant 0 : i32
    return %arg0, %c0_i32, %c0_i32_0 : i32, i32, i32
  }
}

</mosaic_0001>

<bundles_post_ra>
// kernel: tpu_custom_call.1
= control target key start
LH: loop header
LB: loop body
LE: loop exit
PB: predicated region body
PF: predicated region fallthrough
CT: control target
= control target key end

     0   :  { %s3221_s18 = smov 0   ;;  %s4547_s0 = inlined_call_operand.vmem [shape: bf16[2,256,32], index: 0, kind: input, shape index: {}]   ;;  %s4548_s1 = inlined_call_operand.vmem [shape: bf16[32,8], index: 1, kind: input, shape index: {}]   ;;  %s4549_s2 = inlined_call_operand.vmem [shape: bf16[72,8], index: 2, kind: input, shape index: {}]   ;;  %s4550_s3 = inlined_call_operand.vmem [shape: bf16[8,32], index: 3, kind: input, shape index: {}]   ;;  %s4551_s4 = inlined_call_operand.vmem [shape: f32[6,32], index: 4, kind: input, shape index: {}]   ;;  %s4552_s5 = inlined_call_operand.vmem [shape: bf16[2,256,32], index: 5, kind: output, shape index: {}]  }
   0x1 LB: > { %s2861_s19 = sadd.s32 4294967295, %s3180_s18   ;;  %p2865_p0 = scmp.ge.s32.totalorder %s3180_s18, 1  ;;  %s3180_s18 = sphi %s3221_s18, %s15_s18  }
   0x2   : > { %p187_p1 = scmp.lt.s32.totalorder %s3180_s18, 3 }
   0x4   : > { %p188_p2 = pnand %p2865_p0, %p187_p1 }
   0x5   : > { %p215_p3 = scmp.lt.s32.totalorder (!%p188_p2), %s2861_s19, 1  ;;  %s3183_s28 = smov (!%p188_p2), 8  }
   0x6   : > { %191 = sbr.rel (%p188_p2) target bundleno = 920 (0x398), region = 40  ;;  %s3184_s29 = smov (!%p188_p2), 16  }
   0x7   : > { %s3185_s9 = smov (!%p188_p2), 32   ;;  %s3186_s10 = smov (!%p188_p2), 56  }
   0x8   : > { %s3187_s11 = smov (!%p188_p2), 40   ;;  %s3188_s12 = smov (!%p188_p2), 24  }
   0x9   : > { %s3189_s13 = smov (!%p188_p2), 48   ;;  %s3190_s14 = smov (!%p188_p2), 64  }
   0xb   : > { %v3117_v0 = vld [vmem:[%s4548_s1 + $0x8] sm:$0xff]  ;;  %v3116_v1 = vld [vmem:[%s4548_s1] sm:$0xff]  ;;  %s4558_s19 = smov (!%p215_p3, %s2861_s19), 1  ;;  %vm360_vm0 = vcmask 261120   ;;  %vm596_vm1 = vcmask 60416   ;;  %v3182_v10 = vmov 0  }
   0xc   : > { %415 = vmatpush.bf16.msra.mxu0 %v3117_v0  ;;  %3140 = vmatpush.bf16.msra.mxu3 %v3117_v0  ;;  %s3098_s24 = sshll.u32 %s4558_s19, 7  ;;  %598 = vst.msk [vmem:[#allocation2 + $0x4] sm:$0xf] %vm596_vm1, %v3182_v10  ;;  %vm1130_vm2 = vsmask.f32 3328  ;;  %vm2231_vm8 = vcmask 1043456  }
   0xd   : > { %s3243_s27 = scalar_lea.vmem %s4547_s0, %s3098_s24  ;;  %599 = vst.msk [vmem:[#allocation2 + $0x8] sm:$0xf] %vm596_vm1, %v3182_v10  ;;  %vm1131_vm3 = vsmask.f32 7440  ;;  %v3340_v36 = vld [vmem:[%s4551_s4] ss:$0 sm:$0xff] }
   0xe   : > { %v3100_v2 = vld [vmem:[%s3243_s27] sm:$0xff]  ;;  %v3113_v3 = vld [vmem:[%s3243_s27 + $0x68] sm:$0xff]  ;;  %v3114_v5 = vld [vmem:[%s3243_s27 + $0x70] sm:$0xff]  ;;  %597 = vst.msk [vmem:[#allocation2] sm:$0xf] %vm596_vm1, %v3182_v10  ;;  %vm1883_vm9 = vcmask 64512  }
   0xf   : > { %v3101_v4 = vld [vmem:[%s3243_s27 + $0x8] sm:$0xff]  ;;  %v3102_v6 = vld [vmem:[%s3243_s27 + $0x10] sm:$0xff]  ;;  %v3103_v7 = vld [vmem:[%s3243_s27 + $0x18] sm:$0xff]  ;;  %600 = vst.msk [vmem:[#allocation2 + $0xc] sm:$0xf] %vm596_vm1, %v3182_v10  ;;  %vm1932_vm10 = vcmask 130048  }
  0x10   : > { %416 = vmatpush.bf16.msra.mxu0 %v3116_v1  ;;  %3141 = vmatpush.bf16.msra.mxu3 %v3116_v1  ;;  %v3104_v8 = vld [vmem:[%s3243_s27 + $0x20] sm:$0xff]  ;;  %v3105_v9 = vld [vmem:[%s3243_s27 + $0x28] sm:$0xff]  ;;  %602 = vst.msk [vmem:[#allocation2 + $0x110] sm:$0xf] %vm596_vm1, %v3182_v10  ;;  %v3106_v22 = vld [vmem:[%s3243_s27 + $0x30] sm:$0xff]  ;;  %vm1965_vm11 = vcmask 195584  }
  0x11   : > { %603 = vst.msk [vmem:[#allocation2 + $0x114] sm:$0xf] %vm596_vm1, %v3182_v10  ;;  %vm3312_vm4 = vmor %vm1130_vm2, %vm1131_vm3  ;;  %v3349_v37 = vld [vmem:[%s4551_s4 + $0x1] ss:$0 sm:$0xff]  ;;  %v3107_v40 = vld [vmem:[%s3243_s27 + $0x38] sm:$0xff]  ;;  %vm2030_vm12 = vcmask 326656  }
  0x12   : > { %604 = vst.msk [vmem:[#allocation2 + $0x118] sm:$0xf] %vm596_vm1, %v3182_v10  ;;  %vm775_vm5 = vsmask.f32 256  ;;  %vm776_vm6 = vsmask.f32 4368 }
  0x13   : > { %2942 = vmatmul.msk.bf16.vlgmr.msra.gmra.mxu0 %vm360_vm0, %v3100_v2  ;;  %2955 = vmatmul.msk.bf16.vlgmr.msra.gmra.mxu3 %vm360_vm0, %v3113_v3  ;;  %605 = vst.msk [vmem:[#allocation2 + $0x11c] sm:$0xf] %vm596_vm1, %v3182_v10  ;;  %v3277_v11 = vld [vmem:[#allocation2 + $0x4] sm:$0xf]  ;;  %vm3437_vm7 = vmor %vm775_vm5, %vm776_vm6  ;;  %vm2063_vm13 = vcmask 392192   ;;  %vm2096_vm14 = vcmask 457728  }
  0x14   : > { %607 = vst.msk [vmem:[#allocation2 + $0x10] sm:$0xf] %vm596_vm1, %v3182_v10  ;;  %v3281_v12 = vld [vmem:[#allocation2 + $0x8] sm:$0xf]  ;;  %v784_v13 = vshrl.u32 %v3277_v11, 16  ;;  %v787_v14 = vshll.u32 %v3277_v11, 16 }
  0x15   : > { %608 = vst.msk [vmem:[#allocation2 + $0x20] sm:$0xf] %vm596_vm1, %v3182_v10  ;;  %v793_v15 = vshrl.u32 %v3281_v12, 16  ;;  %v796_v16 = vshll.u32 %v3281_v12, 16  ;;  %v3118_v19 = vld [vmem:[#allocation2 + $0x4] sm:$0xff]  ;;  %vm2129_vm15 = vcmask 523264  }
  0x16   : > { %609 = vst.msk [vmem:[#allocation2 + $0x30] sm:$0xf] %vm596_vm1, %v3182_v10  ;;  %v1133_v17 = vrot.slane %v784_v13, 4  ;;  %v1134_v18 = vrot.slane %v787_v14, 5  ;;  %v706_v20 = vld [vmem:[#allocation2 + $0xc] sm:$0xf]  ;;  %1557 = vrot.lane.b32.xlu0 %v3118_v19, %s3183_s28 }
  0x17   : > { %610 = vst.msk [vmem:[#allocation2 + $0x40] sm:$0xf] %vm596_vm1, %v3182_v10  ;;  %v1137_v21 = vrot.slane %v796_v16, 5  ;;  %v1139_v24 = vrot.slane %v793_v15, 4  ;;  %v1143_v25 = vshll.u32 %v706_v20, 16  ;;  %vm2198_vm2 = vcmask 588800  }
  0x18   : > { %611 = vst.msk [vmem:[#allocation2 + $0x50] sm:$0xf] %vm596_vm1, %v3182_v10  ;;  %v1135_v23 = vor.u32 %v1134_v18, %v1133_v17 }
  0x19   : > { %612 = vst.msk [vmem:[#allocation2 + $0x60] sm:$0xf] %vm596_vm1, %v3182_v10  ;;  %v1140_v26 = vor.u32 %v1139_v24, %v1137_v21  ;;  %v1145_v29 = vrot.slane %v1143_v25, 5 }
  0x1a   : > { %613 = vst.msk [vmem:[#allocation2 + $0x70] sm:$0xf] %vm596_vm1, %v3182_v10  ;;  %v1136_v28 = vrot.slane %v1135_v23, 4 }
  0x1b   : > { %614 = vst.msk [vmem:[#allocation2 + $0x80] sm:$0xf] %vm596_vm1, %v3182_v10  ;;  %v1141_v30 = vrot.slane %v1140_v26, 4  ;;  %v3108_v26 = vld [vmem:[%s3243_s27 + $0x40] sm:$0xff] }
  0x1c   : > { %615 = vst.msk [vmem:[#allocation2 + $0x90] sm:$0xf] %vm596_vm1, %v3182_v10  ;;  %v1138_v31 = vsel %vm3312_vm4, %v1136_v28, %v1137_v21 }
  0x1d   : > { %616 = vst.msk [vmem:[#allocation2 + $0xa0] sm:$0xf] %vm596_vm1, %v3182_v10  ;;  %v1146_v32 = vsel %vm3312_vm4, %v1141_v30, %v1145_v29  ;;  %v1589_v33 = vunpack.c.l.b16 %v1138_v31 }
  0x1e   : > { %617 = vst.msk [vmem:[#allocation2 + $0xb0] sm:$0xf] %vm596_vm1, %v3182_v10  ;;  %v1590_v34 = vunpack.c.l.b16 %v1146_v32 }
  0x1f   : > { %618 = vst.msk [vmem:[#allocation2 + $0xc0] sm:$0xf] %vm596_vm1, %v3182_v10 }
  0x20   : > { %619 = vst.msk [vmem:[#allocation2 + $0xd0] sm:$0xf] %vm596_vm1, %v3182_v10  ;;  %v1621_v35 = vpack.c.b16 %v1590_v34, %v1589_v33 }
  0x21   : > { %620 = vst.msk [vmem:[#allocation2 + $0xe0] sm:$0xf] %vm596_vm1, %v3182_v10 }
  0x22   : > { %621 = vst.msk [vmem:[#allocation2 + $0xf0] sm:$0xf] %vm596_vm1, %v3182_v10  ;;  %1637 = vrot.lane.b32.xlu0 %v1621_v35, %s3184_s29 }
  0x23   : > { %2943 = vmatmul.msk.bf16.gmra.mxu0 %vm360_vm0, %v3101_v4  ;;  %2956 = vmatmul.msk.bf16.gmra.mxu3 %vm360_vm0, %v3114_v5  ;;  %622 = vst.msk [vmem:[#allocation2 + $0x100] sm:$0xf] %vm596_vm1, %v3182_v10 }
  0x24   : > { %623 = vst.msk [vmem:[#allocation2 + $0x1c] sm:$0xf] %vm596_vm1, %v3182_v10 }
  0x25   : > { %624 = vst.msk [vmem:[#allocation2 + $0x2c] sm:$0xf] %vm596_vm1, %v3182_v10 }
  0x26   : > { %625 = vst.msk [vmem:[#allocation2 + $0x3c] sm:$0xf] %vm596_vm1, %v3182_v10 }
  0x27   : > { %626 = vst.msk [vmem:[#allocation2 + $0x4c] sm:$0xf] %vm596_vm1, %v3182_v10 }
  0x28   : > { %627 = vst.msk [vmem:[#allocation2 + $0x5c] sm:$0xf] %vm596_vm1, %v3182_v10  ;;  %v759_v24 = vld [vmem:[#allocation2 + $0xe0] sm:$0xf] }
  0x29   : > { %628 = vst.msk [vmem:[#allocation2 + $0x6c] sm:$0xf] %vm596_vm1, %v3182_v10  ;;  %v1087_v33 = vshrl.u32 %v759_v24, 16 }
  0x2a   : > { %629 = vst.msk [vmem:[#allocation2 + $0x7c] sm:$0xf] %vm596_vm1, %v3182_v10 }
  0x2b   : > { %630 = vst.msk [vmem:[#allocation2 + $0x8c] sm:$0xf] %vm596_vm1, %v3182_v10  ;;  %v710_v4 = vld [vmem:[#allocation2 + $0x1c] sm:$0xf] }
  0x2c   : > { %631 = vst.msk [vmem:[#allocation2 + $0x9c] sm:$0xf] %vm596_vm1, %v3182_v10  ;;  %v1157_v19 = vshll.u32 %v710_v4, 16 }
  0x2d   : > { %632 = vst.msk [vmem:[#allocation2 + $0xac] sm:$0xf] %vm596_vm1, %v3182_v10 }
  0x2e   : > { %633 = vst.msk [vmem:[#allocation2 + $0xbc] sm:$0xf] %vm596_vm1, %v3182_v10 }
  0x2f   : > { %634 = vst.msk [vmem:[#allocation2 + $0xcc] sm:$0xf] %vm596_vm1, %v3182_v10 }
  0x30   : > { %635 = vst.msk [vmem:[#allocation2 + $0xdc] sm:$0xf] %vm596_vm1, %v3182_v10 }
  0x31   : > { %636 = vst.msk [vmem:[#allocation2 + $0xec] sm:$0xf] %vm596_vm1, %v3182_v10 }
  0x32   : > { %637 = vst.msk [vmem:[#allocation2 + $0xfc] sm:$0xf] %vm596_vm1, %v3182_v10 }
  0x33   : > { %2944 = vmatmul.msk.bf16.gmra.mxu0 %vm360_vm0, %v3102_v6  ;;  %638 = vst.msk [vmem:[#allocation2 + $0x10c] sm:$0xf] %vm596_vm1, %v3182_v10 }
  0x43   : > { %2945 = vmatmul.msk.bf16.gmra.mxu0 %vm360_vm0, %v3103_v7 }
  0x53   : > { %2946 = vmatmul.msk.bf16.gmra.mxu0 %vm360_vm0, %v3104_v8 }
  0x63   : > { %2947 = vmatmul.msk.bf16.gmra.mxu0 %vm360_vm0, %v3105_v9 }
  0x73   : > { %2948 = vmatmul.msk.bf16.gmra.mxu0 %vm360_vm0, %v3106_v22 }
  0x83   : > { %2949 = vmatmul.msk.bf16.gmra.mxu0 %vm360_vm0, %v3107_v40  ;;  %v707_v40 = vld [vmem:[#allocation2 + $0x10] sm:$0xf] }
  0x90   : > { %v418_v38 = vpop.f32.mrf.mxu0 }
  0x91   : > { %v499_v39 = vmul.f32 %v3340_v36, %v418_v38 }
  0x93   : > { %v532_v41 = vadd.f32 %v3349_v37, %v499_v39  ;;  %2950 = vmatmul.msk.bf16.gmra.mxu0 %vm360_vm0, %v3108_v26  ;;  %v1159_v39 = vrot.slane %v1157_v19, 5 }
  0x95   : > { %v564_v42 = vmax.f32 %v532_v41, 0.0 }
  0x96   : > { %v483_v43 = vpop.f32.mrf.mxu3 }
  0x97   : > { %v639_v44 = vpack.c.bf16 %v564_v42, %v564_v42  ;;  %v525_v45 = vmul.f32 %v3340_v36, %v483_v43 }
  0x98   : > { %v420_v46 = vpop.f32.mrf.mxu0 }
  0x99   : > { %671 = vst.msk [vmem:[#allocation2 + $0x14] sm:$0xf] %vm596_vm1, %v639_v44  ;;  %v558_v47 = vadd.f32 %v3349_v37, %v525_v45  ;;  %v500_v48 = vmul.f32 %v3340_v36, %v420_v46 }
  0x9b   : > { %v590_v49 = vmax.f32 %v558_v47, 0.0  ;;  %v533_v50 = vadd.f32 %v3349_v37, %v500_v48 }
  0x9d   : > { %v665_v51 = vpack.c.bf16 %v590_v49, %v590_v49  ;;  %v565_v52 = vmax.f32 %v533_v50, 0.0 }
  0x9e   : > { %v485_v53 = vpop.f32.mrf.mxu3 }
  0x9f   : > { %697 = vst.msk [vmem:[#allocation2 + $0xe4] sm:$0xf] %vm596_vm1, %v665_v51  ;;  %v640_v54 = vpack.c.bf16 %v565_v52, %v565_v52  ;;  %v526_v55 = vmul.f32 %v3340_v36, %v485_v53  ;;  %v2972_v51 = vrot.slane %v1087_v33, 11  ;;  %v801_v52 = vshrl.u32 %v707_v40, 16  ;;  %v3109_v33 = vld [vmem:[%s3243_s27 + $0x48] sm:$0xff] }
  0xa0   : > { %v423_v56 = vpop.f32.mrf.mxu0  ;;  %v3390_v57 = vld [vmem:[#allocation2 + $0x14] sm:$0xf]  ;;  %v711_v40 = vld [vmem:[#allocation2 + $0x20] sm:$0xf] }
  0xa1   : > { %672 = vst.msk [vmem:[#allocation2 + $0x18] sm:$0xf] %vm596_vm1, %v640_v54  ;;  %v559_v58 = vadd.f32 %v3349_v37, %v526_v55  ;;  %v501_v59 = vmul.f32 %v3340_v36, %v423_v56  ;;  %v806_v60 = vshrl.u32 %v3390_v57, 16  ;;  %v809_v61 = vshll.u32 %v3390_v57, 16 }
  0xa3   : > { %v591_v62 = vmax.f32 %v559_v58, 0.0  ;;  %v534_v63 = vadd.f32 %v3349_v37, %v501_v59  ;;  %v1147_v0 = vrot.slane %v806_v60, 4  ;;  %v1148_v1 = vrot.slane %v809_v61, 5  ;;  %2951 = vmatmul.msk.bf16.gmra.mxu0 %vm360_vm0, %v3109_v33 }
  0xa5   : > { %v666_v2 = vpack.c.bf16 %v591_v62, %v591_v62  ;;  %v566_v3 = vmax.f32 %v534_v63, 0.0  ;;  %v1149_v18 = vor.u32 %v1148_v1, %v1147_v0  ;;  %v808_v0 = vrot.slane %v806_v60, 7 }
  0xa6   : > { %v488_v5 = vpop.f32.mrf.mxu3  ;;  %v3404_v8 = vld [vmem:[#allocation2 + $0xe4] sm:$0xf] }
  0xa7   : > { %698 = vst.msk [vmem:[#allocation2 + $0xe8] sm:$0xf] %vm596_vm1, %v666_v2  ;;  %v641_v6 = vpack.c.bf16 %v566_v3, %v566_v3  ;;  %v527_v7 = vmul.f32 %v3340_v36, %v488_v5  ;;  %v1092_v25 = vshrl.u32 %v3404_v8, 16  ;;  %v1150_v32 = vrot.slane %v1149_v18, 4 }
  0xa8   : > { %v3119_v9 = vld [vmem:[#allocation2 + $0x14] sm:$0xff]  ;;  %v425_v10 = vpop.f32.mrf.mxu0  ;;  %v1095_v45 = vshll.u32 %v3404_v8, 16  ;;  %v823_v8 = vshrl.u32 %v711_v40, 16 }
  0xa9   : > { %v3406_v17 = vld [vmem:[#allocation2 + $0x18] sm:$0xf]  ;;  %673 = vst.msk [vmem:[#allocation2 + $0x24] sm:$0xf] %vm596_vm1, %v641_v6  ;;  %v502_v20 = vmul.f32 %v3340_v36, %v425_v10  ;;  %v560_v21 = vadd.f32 %v3349_v37, %v527_v7  ;;  %1559 = vrot.lane.b32.xlu2 %v3119_v9, %s3183_s28  ;;  %1709 = vrot.lane.b32.xlu1 %v3119_v9, %s3185_s9  ;;  %v1094_v44 = vrot.slane %v1092_v25, 7 }
  0xaa   : > { %v815_v22 = vshrl.u32 %v3406_v17, 16  ;;  %v818_v23 = vshll.u32 %v3406_v17, 16 }
  0xab   : > { %v535_v28 = vadd.f32 %v3349_v37, %v502_v20  ;;  %v592_v29 = vmax.f32 %v560_v21, 0.0  ;;  %v1097_v3 = vor.u32 %v1095_v45, %v1094_v44  ;;  %v1099_v4 = vrot.slane %v1094_v44, 4 }
  0xac   : > { %v1151_v30 = vrot.slane %v818_v23, 5  ;;  %v1153_v31 = vrot.slane %v815_v22, 4  ;;  %v817_v53 = vrot.slane %v815_v22, 7  ;;  %v2959_v20 = vrot.slane %v801_v52, 11 }
  0xad   : > { %v567_v34 = vmax.f32 %v535_v28, 0.0  ;;  %v667_v35 = vpack.c.bf16 %v592_v29, %v592_v29  ;;  %v1098_v19 = vsel %vm3437_vm7, %v2972_v51, %v1097_v3  ;;  %v811_v21 = vor.u32 %v809_v61, %v808_v0 }
  0xae   : > { %v1154_v38 = vor.u32 %v1153_v31, %v1151_v30  ;;  %v1152_v41 = vsel %vm3312_vm4, %v1150_v32, %v1151_v30  ;;  %v490_v42 = vpop.f32.mrf.mxu3  ;;  %v761_v43 = vld [vmem:[#allocation2 + $0xe8] sm:$0xf]  ;;  %v820_v60 = vor.u32 %v818_v23, %v817_v53  ;;  %v813_v22 = vrot.slane %v808_v0, 4  ;;  %v762_v32 = vld [vmem:[#allocation2 + $0xec] sm:$0xf] }
  0xaf   : > { %v642_v46 = vpack.c.bf16 %v567_v34, %v567_v34  ;;  %699 = vst.msk [vmem:[#allocation2 + $0xf4] sm:$0xf] %vm596_vm1, %v667_v35  ;;  %v528_v48 = vmul.f32 %v3340_v36, %v490_v42  ;;  %v1101_v49 = vshrl.u32 %v761_v43, 16  ;;  %v3132_v50 = vld [vmem:[#allocation2 + $0xe4] sm:$0xff]  ;;  %v1104_v59 = vshll.u32 %v761_v43, 16 }
  0xb0   : > { %v1155_v47 = vrot.slane %v1154_v38, 4  ;;  %v428_v54 = vpop.f32.mrf.mxu0  ;;  %v1591_v62 = vunpack.c.l.b16 %v1152_v41  ;;  %v821_v30 = vsel %vm3437_vm7, %v813_v22, %v820_v60  ;;  %v1457_v57 = vunpack.c.l.b16 %v1098_v19  ;;  %v712_v61 = vld [vmem:[#allocation2 + $0x24] sm:$0xf] }
  0xb1   : > { %674 = vst.msk [vmem:[#allocation2 + $0x28] sm:$0xf] %vm596_vm1, %v642_v46  ;;  %v561_v56 = vadd.f32 %v3349_v37, %v528_v48  ;;  %v1103_v58 = vrot.slane %v1101_v49, 7  ;;  %1585 = vrot.lane.b32.xlu2 %v3132_v50, %s3183_s28  ;;  %1840 = vrot.lane.b32.xlu1 %v3132_v50, %s3186_s10  ;;  %v503_v1 = vmul.f32 %v3340_v36, %v428_v54  ;;  %v3450_v29 = vrot.slane %v1104_v59, 5 }
  0xb2   : > { %v1160_v55 = vsel %vm3312_vm4, %v1155_v47, %v1159_v39  ;;  %v1335_v23 = vrot.slane %v1101_v49, 4  ;;  %v812_v34 = vsel %vm3437_vm7, %v2959_v20, %v811_v21  ;;  %v1329_v38 = vrot.slane %v1092_v25, 4 }
  0xb3   : > { %v1592_v63 = vunpack.c.l.b16 %v1160_v55  ;;  %v593_v2 = vmax.f32 %v561_v56, 0.0  ;;  %v1106_v5 = vor.u32 %v1104_v59, %v1103_v58  ;;  %v536_v9 = vadd.f32 %v3349_v37, %v503_v1 }
  0xb4   : > { %v1330_v39 = vrot.slane %v1095_v45, 5  ;;  %v1432_v42 = vunpack.c.l.b16 %v821_v30  ;;  %v1336_v43 = vor.u32 %v1335_v23, %v3450_v29  ;;  %v1339_v44 = vshll.u32 %v762_v32, 16 }
  0xb5   : > { %v1622_v6 = vpack.c.b16 %v1592_v63, %v1591_v62  ;;  %v668_v10 = vpack.c.bf16 %v593_v2, %v593_v2  ;;  %v1107_v17 = vsel %vm3437_vm7, %v1099_v4, %v1106_v5  ;;  %v568_v18 = vmax.f32 %v536_v9, 0.0 }
  0xb6   : > { %v1458_v24 = vunpack.c.l.b16 %v1107_v17  ;;  %v828_v48 = vshrl.u32 %v712_v61, 16  ;;  %v1431_v49 = vunpack.c.l.b16 %v812_v34  ;;  %v1331_v45 = vor.u32 %v1330_v39, %v1329_v38  ;;  %v714_v17 = vld [vmem:[#allocation2 + $0x2c] sm:$0xf]  ;;  %v764_v38 = vld [vmem:[#allocation2 + $0xf4] sm:$0xf] }
  0xb7   : > { %1639 = vrot.lane.b32.xlu0 %v1622_v6, %s3184_s29  ;;  %700 = vst.msk [vmem:[#allocation2 + $0xf8] sm:$0xf] %vm596_vm1, %v668_v10  ;;  %v643_v26 = vpack.c.bf16 %v568_v18, %v568_v18  ;;  %v1337_v53 = vrot.slane %v1336_v43, 4  ;;  %v1341_v54 = vrot.slane %v1339_v44, 5  ;;  %v831_v55 = vshll.u32 %v712_v61, 16 }
  0xb8   : > { %v430_v28 = vpop.f32.mrf.mxu0  ;;  %v3464_v41 = vpack.c.b16 %v1458_v24, %v1457_v57  ;;  %v713_v46 = vld [vmem:[#allocation2 + $0x28] sm:$0xf]  ;;  %v3470_v52 = vpack.c.b16 %v1432_v42, %v1431_v49  ;;  %v1332_v63 = vrot.slane %v1331_v45, 4  ;;  %v2960_v0 = vrot.slane %v823_v8, 11  ;;  %v3110_v57 = vld [vmem:[%s3243_s27 + $0x50] sm:$0xff] }
  0xb9   : > { %v504_v31 = vmul.f32 %v3340_v36, %v430_v28  ;;  %1735 = vrot.lane.b32.xlu1 %v3132_v50, %s3185_s9  ;;  %1744 = vrot.lane.b32.xlu2 %v1622_v6, %s3187_s11  ;;  %675 = vst.msk [vmem:[#allocation2 + $0x34] sm:$0xf] %vm596_vm1, %v643_v26  ;;  %v830_v50 = vrot.slane %v828_v48, 7  ;;  %v837_v51 = vshrl.u32 %v713_v46, 16  ;;  %v840_v59 = vshll.u32 %v713_v46, 16  ;;  %v3120_v3 = vld [vmem:[#allocation2 + $0x24] sm:$0xff] }
  0xba   : > { %v1342_v4 = vsel %vm3312_vm4, %v1337_v53, %v1341_v54  ;;  %v1161_v6 = vrot.slane %v828_v48, 4  ;;  %v1162_v9 = vrot.slane %v831_v55, 5  ;;  %v1334_v20 = vsel %vm3312_vm4, %v1332_v63, %v3450_v29  ;;  %2952 = vmatmul.msk.bf16.gmra.mxu0 %vm360_vm0, %v3110_v57  ;;  %v763_v44 = vld [vmem:[#allocation2 + $0xf0] sm:$0xf] }
  0xbb   : > { %v537_v35 = vadd.f32 %v3349_v37, %v504_v31  ;;  %v839_v58 = vrot.slane %v837_v51, 7  ;;  %v835_v1 = vrot.slane %v830_v50, 4  ;;  %v833_v5 = vor.u32 %v831_v55, %v830_v50 }
  0xbc   : > { %v1165_v60 = vrot.slane %v840_v59, 5  ;;  %v1167_v18 = vrot.slane %v837_v51, 4  ;;  %v1618_v22 = vunpack.c.l.b16 %v1342_v4  ;;  %v1171_v26 = vshll.u32 %v714_v17, 16 }
  0xbd   : > { %v569_v47 = vmax.f32 %v537_v35, 0.0  ;;  %v842_v10 = vor.u32 %v840_v59, %v839_v58  ;;  %v834_v24 = vsel %vm3437_vm7, %v2960_v0, %v833_v5  ;;  %v1163_v30 = vor.u32 %v1162_v9, %v1161_v6 }
  0xbe   : > { %v1168_v31 = vor.u32 %v1167_v18, %v1165_v60  ;;  %v1617_v29 = vunpack.c.l.b16 %v1334_v20  ;;  %v1433_v34 = vunpack.c.l.b16 %v834_v24  ;;  %v765_v39 = vld [vmem:[#allocation2 + $0xf8] sm:$0xf]  ;;  %v1173_v43 = vrot.slane %v1171_v26, 5 }
  0xbf   : > { %1698 = vrot.lane.b32.xlu0 %v3464_v41, %s3188_s12  ;;  %v644_v25 = vpack.c.bf16 %v569_v47, %v569_v47  ;;  %v843_v23 = vsel %vm3437_vm7, %v835_v1, %v842_v10  ;;  %v1164_v40 = vrot.slane %v1163_v30, 4  ;;  %v1114_v47 = vshrl.u32 %v764_v38, 16  ;;  %v3133_v5 = vld [vmem:[#allocation2 + $0xf4] sm:$0xff] }
  0xc0   : > { %v433_v56 = vpop.f32.mrf.mxu0  ;;  %v1635_v33 = vpack.c.b16 %v1618_v22, %v1617_v29  ;;  %v1434_v35 = vunpack.c.l.b16 %v843_v23  ;;  %v1169_v42 = vrot.slane %v1168_v31, 4  ;;  %v1123_v48 = vshrl.u32 %v765_v39, 16  ;;  %v3111_v18 = vld [vmem:[%s3243_s27 + $0x58] sm:$0xff] }
  0xc1   : > { %676 = vst.msk [vmem:[#allocation2 + $0x38] sm:$0xf] %vm596_vm1, %v644_v25  ;;  %v505_v62 = vmul.f32 %v3340_v36, %v433_v56  ;;  %1803 = vrot.lane.b32.xlu2 %v3464_v41, %s3189_s13  ;;  %1672 = vrot.lane.b32.xlu1 %v3470_v52, %s3188_s12  ;;  %v1109_v25 = vshrl.u32 %v763_v44, 16  ;;  %v1166_v45 = vsel %vm3312_vm4, %v1164_v40, %v1165_v60  ;;  %v1116_v51 = vrot.slane %v1114_v47, 7  ;;  %v766_v23 = vld [vmem:[#allocation2 + $0xfc] sm:$0xf] }
  0xc2   : > { %v3497_v8 = vpack.c.b16 %v1434_v35, %v1433_v34  ;;  %v1174_v50 = vsel %vm3312_vm4, %v1169_v42, %v1173_v43  ;;  %v1125_v53 = vrot.slane %v1123_v48, 7  ;;  %v1117_v55 = vshll.u32 %v764_v38, 16  ;;  %v715_v34 = vld [vmem:[#allocation2 + $0x30] sm:$0xf] }
  0xc3   : > { %v538_v2 = vadd.f32 %v3349_v37, %v505_v62  ;;  %v1126_v56 = vshll.u32 %v765_v39, 16  ;;  %v1593_v59 = vunpack.c.l.b16 %v1166_v45  ;;  %v1594_v62 = vunpack.c.l.b16 %v1174_v50 }
  0xc4   : > { %v2973_v63 = vrot.slane %v1109_v25, 11  ;;  %v1119_v0 = vor.u32 %v1117_v55, %v1116_v51  ;;  %v1121_v1 = vrot.slane %v1116_v51, 4  ;;  %v1344_v20 = vrot.slane %v1117_v55, 5 }
  0xc5   : > { %v570_v19 = vmax.f32 %v538_v2, 0.0  ;;  %v1128_v2 = vor.u32 %v1126_v56, %v1125_v53  ;;  %v3510_v6 = vpack.c.b16 %v1594_v62, %v1593_v59  ;;  %v1347_v26 = vrot.slane %v1126_v56, 5 }
  0xc6   : > { %v1120_v9 = vsel %vm3437_vm7, %v2973_v63, %v1119_v0  ;;  %v845_v42 = vshrl.u32 %v715_v34, 16  ;;  %v718_v0 = vld [vmem:[#allocation2 + $0x3c] sm:$0xf] }
  0xc7   : > { %1816 = vrot.lane.b32.xlu0 %v3120_v3, %s3186_s10  ;;  %v645_v21 = vpack.c.bf16 %v570_v19, %v570_v19  ;;  %v1129_v10 = vsel %vm3437_vm7, %v1121_v1, %v1128_v2  ;;  %v1343_v19 = vrot.slane %v1114_v47, 4  ;;  %v1459_v22 = vunpack.c.l.b16 %v1120_v9 }
  0xc8   : > { %v435_v28 = vpop.f32.mrf.mxu0  ;;  %v1460_v24 = vunpack.c.l.b16 %v1129_v10  ;;  %v717_v35 = vld [vmem:[#allocation2 + $0x38] sm:$0xf]  ;;  %v2961_v51 = vrot.slane %v845_v42, 11 }
  0xc9   : > { %677 = vst.msk [vmem:[#allocation2 + $0x44] sm:$0xf] %vm596_vm1, %v645_v21  ;;  %v506_v32 = vmul.f32 %v3340_v36, %v435_v28  ;;  %1561 = vrot.lane.b32.xlu1 %v3120_v3, %s3183_s28  ;;  %1711 = vrot.lane.b32.xlu2 %v3120_v3, %s3185_s9  ;;  %v1349_v28 = vrot.slane %v1123_v48, 4  ;;  %v1345_v31 = vor.u32 %v1344_v20, %v1343_v19  ;;  %v859_v43 = vshrl.u32 %v717_v35, 16  ;;  %v3121_v55 = vld [vmem:[#allocation2 + $0x34] sm:$0xff] }
  0xca   : > { %2953 = vmatmul.msk.bf16.gmra.mxu0 %vm360_vm0, %v3111_v18  ;;  %v3526_v57 = vpack.c.b16 %v1460_v24, %v1459_v22  ;;  %v862_v25 = vshll.u32 %v717_v35, 16 }
  0xcb   : > { %v539_v61 = vadd.f32 %v3349_v37, %v506_v32  ;;  %v716_v32 = vld [vmem:[#allocation2 + $0x34] sm:$0xf]  ;;  %v1346_v40 = vrot.slane %v1345_v31, 4  ;;  %v1181_v2 = vrot.slane %v859_v43, 4 }
  0xcc   : > { %v850_v39 = vshrl.u32 %v716_v32, 16  ;;  %v853_v48 = vshll.u32 %v716_v32, 16  ;;  %v1179_v1 = vrot.slane %v862_v25, 5 }
  0xcd   : > { %v571_v46 = vmax.f32 %v539_v61, 0.0  ;;  %v1350_v61 = vor.u32 %v1349_v28, %v1347_v26  ;;  %v1348_v50 = vsel %vm3312_vm4, %v1346_v40, %v1347_v26 }
  0xce   : > { %v852_v47 = vrot.slane %v850_v39, 7  ;;  %v1175_v53 = vrot.slane %v850_v39, 4  ;;  %v1176_v62 = vrot.slane %v853_v48, 5  ;;  %v1182_v19 = vor.u32 %v1181_v2, %v1179_v1 }
  0xcf   : > { %1875 = vrot.lane.b32.xlu0 %v1635_v33, %s3190_s14  ;;  %v646_v49 = vpack.c.bf16 %v571_v46, %v571_v46  ;;  %v1351_v44 = vrot.slane %v1350_v61, 4 }
  0xd0   : > { %v438_v54 = vpop.f32.mrf.mxu0  ;;  %v857_v59 = vrot.slane %v852_v47, 4  ;;  %v1177_v18 = vor.u32 %v1176_v62, %v1175_v53  ;;  %v720_v34 = vld [vmem:[#allocation2 + $0x44] sm:$0xf] }
  0xd1   : > { %678 = vst.msk [vmem:[#allocation2 + $0x48] sm:$0xf] %vm596_vm1, %v646_v49  ;;  %1770 = vrot.lane.b32.xlu2 %v1635_v33, %s3187_s11  ;;  %1674 = vrot.lane.b32.xlu1 %v3497_v8, %s3188_s12  ;;  %v507_v58 = vmul.f32 %v3340_v36, %v438_v54  ;;  %v861_v49 = vrot.slane %v859_v43, 7  ;;  %v872_v42 = vshrl.u32 %v720_v34, 16  ;;  %v875_v43 = vshll.u32 %v720_v34, 16 }
  0xd3   : > { %v540_v3 = vadd.f32 %v3349_v37, %v507_v58  ;;  %v855_v58 = vor.u32 %v853_v48, %v852_v47  ;;  %v864_v63 = vor.u32 %v862_v25, %v861_v49  ;;  %v719_v49 = vld [vmem:[#allocation2 + $0x40] sm:$0xf]  ;;  %v1189_v25 = vrot.slane %v872_v42, 4 }
  0xd5   : > { %v572_v4 = vmax.f32 %v540_v3, 0.0  ;;  %v856_v10 = vsel %vm3437_vm7, %v2961_v51, %v855_v58  ;;  %v867_v51 = vshrl.u32 %v719_v49, 16 }
  0xd6   : > { %v1435_v26 = vunpack.c.l.b16 %v856_v10 }
  0xd7   : > { %1665 = vrot.lane.b32.xlu0 %v1635_v33, %s3184_s29  ;;  %v647_v17 = vpack.c.bf16 %v572_v4, %v572_v4  ;;  %v1353_v33 = vshll.u32 %v766_v23, 16  ;;  %v1178_v23 = vrot.slane %v1177_v18, 4 }
  0xd8   : > { %v440_v60 = vpop.f32.mrf.mxu0  ;;  %v721_v39 = vld [vmem:[#allocation2 + $0x48] sm:$0xf] }
  0xd9   : > { %1842 = vrot.lane.b32.xlu2 %v3133_v5, %s3186_s10  ;;  %1851 = vrot.lane.b32.xlu1 %v3510_v6, %s3190_s14  ;;  %679 = vst.msk [vmem:[#allocation2 + $0x54] sm:$0xf] %vm596_vm1, %v647_v17  ;;  %v508_v21 = vmul.f32 %v3340_v36, %v440_v60  ;;  %v1355_v46 = vrot.slane %v1353_v33, 5  ;;  %v1185_v17 = vshll.u32 %v718_v0, 16  ;;  %v865_v60 = vsel %vm3437_vm7, %v857_v59, %v864_v63  ;;  %v722_v59 = vld [vmem:[#allocation2 + $0x4c] sm:$0xf] }
  0xda   : > { %v1436_v28 = vunpack.c.l.b16 %v865_v60  ;;  %v1180_v35 = vsel %vm3312_vm4, %v1178_v23, %v1179_v1  ;;  %v881_v47 = vshrl.u32 %v721_v39, 16  ;;  %v884_v48 = vshll.u32 %v721_v39, 16  ;;  %v3122_v60 = vld [vmem:[#allocation2 + $0x44] sm:$0xff] }
  0xdb   : > { %v541_v30 = vadd.f32 %v3349_v37, %v508_v21  ;;  %v1356_v56 = vsel %vm3312_vm4, %v1351_v44, %v1355_v46  ;;  %v1187_v31 = vrot.slane %v1185_v17, 5  ;;  %v1595_v44 = vunpack.c.l.b16 %v1180_v35 }
  0xdc   : > { %v1620_v9 = vunpack.c.l.b16 %v1356_v56  ;;  %v3558_v33 = vpack.c.b16 %v1436_v28, %v1435_v26  ;;  %v1193_v53 = vrot.slane %v884_v48, 5  ;;  %v874_v56 = vrot.slane %v872_v42, 7 }
  0xdd   : > { %v573_v29 = vmax.f32 %v541_v30, 0.0  ;;  %v1183_v30 = vrot.slane %v1182_v19, 4  ;;  %v883_v58 = vrot.slane %v881_v47, 7  ;;  %v2962_v63 = vrot.slane %v867_v51, 11 }
  0xde   : > { %v1199_v1 = vshll.u32 %v722_v59, 16  ;;  %v726_v59 = vld [vmem:[#allocation2 + $0x5c] sm:$0xf] }
  0xdf   : > { %1746 = vrot.lane.b32.xlu0 %v3510_v6, %s3187_s11  ;;  %v648_v38 = vpack.c.bf16 %v573_v29, %v573_v29  ;;  %v3112_v29 = vld [vmem:[%s3243_s27 + $0x60] sm:$0xff] }
  0xe0   : > { %v443_v45 = vpop.f32.mrf.mxu0  ;;  %2954 = vmatmul.msk.bf16.gmra.mxu0 %vm360_vm0, %v3112_v29  ;;  %v1201_v19 = vrot.slane %v1199_v1, 5 }
  0xe1   : > { %1737 = vrot.lane.b32.xlu2 %v3133_v5, %s3185_s9  ;;  %1700 = vrot.lane.b32.xlu1 %v3526_v57, %s3188_s12  ;;  %680 = vst.msk [vmem:[#allocation2 + $0x58] sm:$0xf] %vm596_vm1, %v648_v38  ;;  %v509_v54 = vmul.f32 %v3340_v36, %v443_v45  ;;  %v1619_v5 = vunpack.c.l.b16 %v1348_v50  ;;  %v1188_v38 = vsel %vm3312_vm4, %v1183_v30, %v1187_v31  ;;  %v1190_v45 = vrot.slane %v875_v43, 5 }
  0xe2   : > { %v1596_v46 = vunpack.c.l.b16 %v1188_v38 }
  0xe3   : > { %v542_v3 = vadd.f32 %v3349_v37, %v509_v54  ;;  %v3550_v24 = vpack.c.b16 %v1620_v9, %v1619_v5  ;;  %v1195_v54 = vrot.slane %v881_v47, 4  ;;  %v1191_v62 = vor.u32 %v1190_v45, %v1189_v25  ;;  %v723_v47 = vld [vmem:[#allocation2 + $0x50] sm:$0xf] }
  0xe4   : > { %v1624_v50 = vpack.c.b16 %v1596_v46, %v1595_v44  ;;  %v889_v51 = vshrl.u32 %v723_v47, 16 }
  0xe5   : > { %v574_v4 = vmax.f32 %v542_v3, 0.0  ;;  %v1196_v0 = vor.u32 %v1195_v54, %v1193_v53  ;;  %v879_v3 = vrot.slane %v874_v56, 4  ;;  %v1192_v9 = vrot.slane %v1191_v62, 4 }
  0xe6   : > { %v2963_v1 = vrot.slane %v889_v51, 11 }
  0xe7   : > { %1805 = vrot.lane.b32.xlu0 %v3526_v57, %s3189_s13  ;;  %v649_v20 = vpack.c.bf16 %v574_v4, %v574_v4  ;;  %v886_v4 = vor.u32 %v884_v48, %v883_v58  ;;  %v1197_v18 = vrot.slane %v1196_v0, 4  ;;  %v1194_v26 = vsel %vm3312_vm4, %v1192_v9, %v1193_v53 }
  0xe8   : > { %v445_v21 = vpop.f32.mrf.mxu0  ;;  %v725_v29 = vld [vmem:[#allocation2 + $0x58] sm:$0xf]  ;;  %v1597_v34 = vunpack.c.l.b16 %v1194_v26  ;;  %v1213_v9 = vshll.u32 %v726_v59, 16 }
  0xe9   : > { %1779 = vrot.lane.b32.xlu2 %v3497_v8, %s3189_s13  ;;  %1713 = vrot.lane.b32.xlu1 %v3121_v55, %s3185_s9  ;;  %681 = vst.msk [vmem:[#allocation2 + $0x64] sm:$0xf] %vm596_vm1, %v649_v20  ;;  %v510_v22 = vmul.f32 %v3340_v36, %v445_v21  ;;  %v887_v21 = vsel %vm3437_vm7, %v879_v3, %v886_v4  ;;  %v906_v44 = vshll.u32 %v725_v29, 16 }
  0xea   : > { %v1438_v30 = vunpack.c.l.b16 %v887_v21  ;;  %v1202_v31 = vsel %vm3312_vm4, %v1197_v18, %v1201_v19  ;;  %v2170_v19 = vld [vmem:[%s4549_s2 + $0x20] sm:$0xf] }
  0xeb   : > { %v543_v32 = vadd.f32 %v3349_v37, %v510_v22  ;;  %v1598_v38 = vunpack.c.l.b16 %v1202_v31  ;;  %v1207_v54 = vrot.slane %v906_v44, 5  ;;  %v2188_v26 = vunpack.c.l.b16 %v2170_v19 }
  0xed   : > { %v575_v61 = vmax.f32 %v543_v32, 0.0  ;;  %v724_v32 = vld [vmem:[#allocation2 + $0x54] sm:$0xf]  ;;  %v1625_v49 = vpack.c.b16 %v1598_v38, %v1597_v34 }
  0xee   : > { %v894_v39 = vshrl.u32 %v724_v32, 16 }
  0xef   : > { %1563 = vrot.lane.b32.xlu0 %v3121_v55, %s3183_s28  ;;  %v650_v40 = vpack.c.bf16 %v575_v61, %v575_v61 }
  0xf0   : > { %v448_v2 = vpop.f32.mrf.mxu0  ;;  %v1203_v25 = vrot.slane %v894_v39, 4  ;;  %v896_v53 = vrot.slane %v894_v39, 7 }
  0xf1   : > { %1641 = vrot.lane.b32.xlu2 %v3510_v6, %s3184_s29  ;;  %1877 = vrot.lane.b32.xlu1 %v3550_v24, %s3190_s14  ;;  %v3115_v6 = vld [vmem:[%s3243_s27 + $0x78] sm:$0xff]  ;;  %682 = vst.msk [vmem:[#allocation2 + $0x68] sm:$0xf] %vm596_vm1, %v650_v40  ;;  %v511_v5 = vmul.f32 %v3340_v36, %v448_v2  ;;  %v897_v40 = vshll.u32 %v724_v32, 16 }
  0xf2   : > { %2957 = vmatmul.msk.bf16.gmra.mxu3 %vm360_vm0, %v3115_v6  ;;  %v903_v6 = vshrl.u32 %v725_v29, 16  ;;  %v901_v4 = vrot.slane %v896_v53, 4  ;;  %v2193_v29 = vpack.c.b16 %v2188_v26, %v2188_v26 }
  0xf3   : > { %v544_v10 = vadd.f32 %v3349_v37, %v511_v5  ;;  %v1204_v45 = vrot.slane %v897_v40, 5  ;;  %v899_v2 = vor.u32 %v897_v40, %v896_v53  ;;  %v727_v53 = vld [vmem:[#allocation2 + $0x60] sm:$0xf] }
  0xf4   : > { %v905_v58 = vrot.slane %v903_v6, 7  ;;  %v2233_v40 = vsel %vm2231_vm8, %v2193_v29, 0  ;;  %v730_v29 = vld [vmem:[#allocation2 + $0x6c] sm:$0xf] }
  0xf5   : > { %v576_v22 = vmax.f32 %v544_v10, 0.0  ;;  %v900_v21 = vsel %vm3437_vm7, %v2963_v1, %v899_v2  ;;  %2238 = vmatpush.bf16.msra.mxu1 %v2233_v40  ;;  %3142 = vmatpush.bf16.msrb.mxu3 %v2233_v40  ;;  %v911_v1 = vshrl.u32 %v727_v53, 16 }
  0xf6   : > { %v908_v5 = vor.u32 %v906_v44, %v905_v58  ;;  %v1439_v38 = vunpack.c.l.b16 %v900_v21 }
  0xf7   : > { %1676 = vrot.lane.b32.xlu0 %v3558_v33, %s3188_s12  ;;  %v651_v28 = vpack.c.bf16 %v576_v22, %v576_v22  ;;  %v2964_v21 = vrot.slane %v911_v1, 11 }
  0xf8   : > { %v450_v61 = vpop.f32.mrf.mxu0  ;;  %v729_v51 = vld [vmem:[#allocation2 + $0x68] sm:$0xf] }
  0xf9   : > { %1818 = vrot.lane.b32.xlu2 %v3121_v55, %s3186_s10  ;;  %1781 = vrot.lane.b32.xlu1 %v3558_v33, %s3189_s13  ;;  %v877_v55 = vor.u32 %v875_v43, %v874_v56  ;;  %683 = vst.msk [vmem:[#allocation2 + $0x74] sm:$0xf] %vm596_vm1, %v651_v28  ;;  %v512_v35 = vmul.f32 %v3340_v36, %v450_v61  ;;  %v925_v58 = vshrl.u32 %v729_v51, 16 }
  0xfa   : > { %v909_v28 = vsel %vm3437_vm7, %v901_v4, %v908_v5  ;;  %v3137_v5 = vld [vmem:[%s4549_s2 + $0x8] sm:$0xff] }
  0xfb   : > { %v878_v20 = vsel %vm3437_vm7, %v2962_v63, %v877_v55  ;;  %v545_v46 = vadd.f32 %v3349_v37, %v512_v35  ;;  %v1205_v55 = vor.u32 %v1204_v45, %v1203_v25  ;;  %v1440_v39 = vunpack.c.l.b16 %v909_v28 }
  0xfc   : > { %v1437_v23 = vunpack.c.l.b16 %v878_v20  ;;  %v3123_v20 = vld [vmem:[#allocation2 + $0x54] sm:$0xff]  ;;  %v927_v4 = vrot.slane %v925_v58, 7  ;;  %v1223_v28 = vrot.slane %v925_v58, 4 }
  0xfd   : > { %v577_v48 = vmax.f32 %v545_v46, 0.0  ;;  %v1206_v22 = vrot.slane %v1205_v55, 4  ;;  %v928_v55 = vshll.u32 %v729_v51, 16 }
  0xfe   : > { %v3595_v43 = vpack.c.b16 %v1438_v30, %v1437_v23  ;;  %v1215_v30 = vrot.slane %v1213_v9, 5 }
  0xff   : > { %1853 = vrot.lane.b32.xlu0 %v1624_v50, %s3190_s14  ;;  %v652_v56 = vpack.c.bf16 %v577_v48, %v577_v48  ;;  %v3663_v26 = vrot.slane %v928_v55, 5 }
 0x100   : > { %v453_v62 = vpop.f32.mrf.mxu0 }
 0x101   : > { %1748 = vrot.lane.b32.xlu2 %v1624_v50, %s3187_s11  ;;  %1643 = vrot.lane.b32.xlu1 %v1624_v50, %s3184_s29  ;;  %v1209_v50 = vrot.slane %v903_v6, 4  ;;  %684 = vst.msk [vmem:[#allocation2 + $0x78] sm:$0xf] %vm596_vm1, %v652_v56  ;;  %v513_v63 = vmul.f32 %v3340_v36, %v453_v62  ;;  %v1208_v6 = vsel %vm3312_vm4, %v1206_v22, %v1207_v54 }
 0x102   : > { %v1599_v25 = vunpack.c.l.b16 %v1208_v6 }
 0x103   : > { %v3578_v17 = vpop.permute.xlu2 %1559  ;;  %v1210_v3 = vor.u32 %v1209_v50, %v1207_v54  ;;  %v546_v10 = vadd.f32 %v3349_v37, %v513_v63  ;;  %v728_v50 = vld [vmem:[#allocation2 + $0x64] sm:$0xf] }
 0x104   : > { %v916_v56 = vshrl.u32 %v728_v50, 16  ;;  %v919_v2 = vshll.u32 %v728_v50, 16  ;;  %v1889_v9 = vsel %vm1883_vm9, %v3470_v52, %v3578_v17 }
 0x105   : > { %v578_v18 = vmax.f32 %v546_v10, 0.0  ;;  %v1211_v23 = vrot.slane %v1210_v3, 4  ;;  %v795_v10 = vrot.slane %v793_v15, 7  ;;  %v786_v15 = vrot.slane %v784_v13, 7 }
 0x106   : > { %v918_v3 = vrot.slane %v916_v56, 7  ;;  %v1217_v19 = vrot.slane %v916_v56, 4  ;;  %v1218_v22 = vrot.slane %v919_v2, 5 }
 0x107   : > { %1715 = vrot.lane.b32.xlu0 %v3122_v60, %s3185_s9  ;;  %v653_v31 = vpack.c.bf16 %v578_v18, %v578_v18  ;;  %v1216_v44 = vsel %vm3312_vm4, %v1211_v23, %v1215_v30  ;;  %v703_v18 = vld [vmem:[#allocation2] sm:$0xf]  ;;  %v798_v13 = vor.u32 %v796_v16, %v795_v10  ;;  %v1224_v16 = vor.u32 %v1223_v28, %v3663_v26 }
 0x108   : > { %v455_v32 = vpop.f32.mrf.mxu0  ;;  %v1600_v45 = vunpack.c.l.b16 %v1216_v44  ;;  %v921_v30 = vor.u32 %v919_v2, %v918_v3  ;;  %v779_v17 = vshrl.u32 %v703_v18, 16  ;;  %v3124_v44 = vld [vmem:[#allocation2 + $0x64] sm:$0xff]  ;;  %v789_v51 = vor.u32 %v787_v14, %v786_v15 }
 0x109   : > { %1565 = vrot.lane.b32.xlu2 %v3122_v60, %s3183_s28  ;;  %1820 = vrot.lane.b32.xlu1 %v3122_v60, %s3186_s10  ;;  %v3608_v60 = vpop.permute.xlu0 %1557  ;;  %685 = vst.msk [vmem:[#allocation2 + $0x84] sm:$0xf] %vm596_vm1, %v653_v31  ;;  %v514_v61 = vmul.f32 %v3340_v36, %v455_v32  ;;  %v3139_v36 = vld [vmem:[%s4549_s2 + $0x18] sm:$0xff]  ;;  %v923_v31 = vrot.slane %v918_v3, 4  ;;  %v930_v32 = vor.u32 %v928_v55, %v927_v4  ;;  %v791_v53 = vrot.slane %v786_v15, 4 }
 0x10a   : > { %2239 = vmatpush.bf16.msra.mxu1 %v3139_v36  ;;  %3143 = vmatpush.bf16.msrb.mxu3 %v3139_v36  ;;  %v3651_v63 = vpack.c.b16 %v1600_v45, %v1599_v25  ;;  %v3692_v36 = vld [vmem:[%s4551_s4 + $0x1] ss:$0 sm:$0xff]  ;;  %v922_v25 = vsel %vm3437_vm7, %v2964_v21, %v921_v30  ;;  %v1227_v45 = vshll.u32 %v730_v29, 16  ;;  %v2958_v50 = vrot.slane %v779_v17, 11 }
 0x10b   : > { %v3593_v42 = vpop.permute.xlu2 %1585  ;;  %v547_v46 = vadd.f32 %v3349_v37, %v514_v61  ;;  %v3138_v37 = vld [vmem:[%s4549_s2 + $0x10] sm:$0xff]  ;;  %v3677_v61 = vld [vmem:[%s4551_s4] ss:$0 sm:$0xff]  ;;  %v931_v12 = vsel %vm3437_vm7, %v923_v31, %v930_v32  ;;  %v1441_v56 = vunpack.c.l.b16 %v922_v25  ;;  %v1225_v55 = vrot.slane %v1224_v16, 4 }
 0x10c   : > { %v1442_v58 = vunpack.c.l.b16 %v931_v12  ;;  %v1229_v3 = vrot.slane %v1227_v45, 5  ;;  %v799_v11 = vsel %vm3437_vm7, %v791_v53, %v798_v13 }
 0x10d   : > { %v579_v47 = vmax.f32 %v547_v46, 0.0  ;;  %v1219_v46 = vor.u32 %v1218_v22, %v1217_v19  ;;  %v732_v19 = vld [vmem:[#allocation2 + $0x74] sm:$0xf]  ;;  %v1430_v28 = vunpack.c.l.b16 %v799_v11 }
 0x10e   : > { %2240 = vmatpush.bf16.msra.mxu1 %v3138_v37  ;;  %3144 = vmatpush.bf16.msrb.mxu3 %v3138_v37  ;;  %v3716_v18 = vpack.c.b16 %v1442_v58, %v1441_v56  ;;  %v1230_v30 = vsel %vm3312_vm4, %v1225_v55, %v1229_v3  ;;  %v938_v32 = vshrl.u32 %v732_v19, 16  ;;  %v734_v56 = vld [vmem:[#allocation2 + $0x7c] sm:$0xf] }
 0x10f   : > { %1783 = vrot.lane.b32.xlu0 %v3595_v43, %s3189_s13  ;;  %v654_v54 = vpack.c.bf16 %v579_v47, %v579_v47  ;;  %v1220_v2 = vrot.slane %v1219_v46, 4  ;;  %v1241_v11 = vshll.u32 %v734_v56, 16 }
 0x110   : > { %v458_v52 = vpop.f32.mrf.mxu0  ;;  %v1231_v12 = vrot.slane %v938_v32, 4 }
 0x111   : > { %1750 = vrot.lane.b32.xlu1 %v1625_v49, %s3187_s11  ;;  %1678 = vrot.lane.b32.xlu2 %v3595_v43, %s3188_s12  ;;  %v3636_v48 = vpop.permute.xlu0 %1637  ;;  %686 = vst.msk [vmem:[#allocation2 + $0x88] sm:$0xf] %vm596_vm1, %v654_v54 }
 0x112   : > { %2241 = vmatpush.bf16.msra.mxu1 %v3137_v5  ;;  %3145 = vmatpush.bf16.msrb.mxu3 %v3137_v5  ;;  %v790_v5 = vsel %vm3437_vm7, %v2958_v50, %v789_v51 }
 0x113   : > { %v3605_v0 = vpop.permute.xlu2 %1744  ;;  %v1429_v22 = vunpack.c.l.b16 %v790_v5 }
 0x115   : > { %v1461_v46 = vpack.c.b16 %v1430_v28, %v1429_v22 }
 0x117   : > { %1645 = vrot.lane.b32.xlu0 %v1625_v49, %s3184_s29  ;;  %v1886_v58 = vsel %vm1883_vm9, %v1461_v46, %v3608_v60 }
 0x118   : > { %v460_v4 = vpop.f32.mrf.mxu0 }
 0x119   : > { %1855 = vrot.lane.b32.xlu2 %v1625_v49, %s3190_s14  ;;  %1567 = vrot.lane.b32.xlu1 %v3123_v20, %s3183_s28  ;;  %v3638_v49 = vpack.c.b16 %v1440_v39, %v1439_v38  ;;  %v515_v38 = vmul.f32 %v3677_v61, %v458_v52  ;;  %v3136_v39 = vld [vmem:[%s4549_s2] sm:$0xff]  ;;  %v516_v14 = vmul.f32 %v3677_v61, %v460_v4  ;;  %v941_v52 = vshll.u32 %v732_v19, 16 }
 0x11a   : > { %2242 = vmatpush.bf16.msra.mxu1 %v3136_v39  ;;  %3146 = vmatpush.bf16.msrb.mxu3 %v3136_v39  ;;  %v1602_v39 = vunpack.c.l.b16 %v1230_v30 }
 0x11b   : > { %v3622_v34 = vpop.permute.xlu1 %1709  ;;  %v3624_v35 = vpop.permute.xlu2 %1803  ;;  %v548_v47 = vadd.f32 %v3692_v36, %v515_v38  ;;  %v549_v21 = vadd.f32 %v3692_v36, %v516_v14  ;;  %v1232_v16 = vrot.slane %v941_v52, 5  ;;  %v1934_v14 = vsel %vm1932_vm10, %v1886_v58, %v3636_v48 }
 0x11d   : > { %v580_v54 = vmax.f32 %v548_v47, 0.0  ;;  %v581_v31 = vmax.f32 %v549_v21, 0.0  ;;  %v1233_v4 = vor.u32 %v1232_v16, %v1231_v12 }
 0x11f   : > { %1822 = vrot.lane.b32.xlu0 %v3123_v20, %s3186_s10  ;;  %v655_v1 = vpack.c.bf16 %v580_v54, %v580_v54  ;;  %v656_v13 = vpack.c.bf16 %v581_v31, %v581_v31 }
 0x120   : > { %v463_v47 = vpop.f32.mrf.mxu0 }
 0x121   : > { %1717 = vrot.lane.b32.xlu2 %v3123_v20, %s3185_s9  ;;  %1680 = vrot.lane.b32.xlu1 %v3638_v49, %s3188_s12  ;;  %687 = vst.msk [vmem:[#allocation2 + $0x94] sm:$0xf] %vm596_vm1, %v655_v1  ;;  %v517_v25 = vmul.f32 %v3677_v61, %v463_v47 }
 0x122   : > { %688 = vst.msk [vmem:[#allocation2 + $0x98] sm:$0xf] %vm596_vm1, %v656_v13 }
 0x123   : > { %v3647_v59 = vpop.permute.xlu1 %1840  ;;  %v3649_v62 = vpop.permute.xlu2 %1711 }
 0x127   : > { %1752 = vrot.lane.b32.xlu0 %v3651_v63, %s3187_s11 }
 0x129   : > { %v1640_v20 = vpop.permute.xlu0 %1639  ;;  %1857 = vrot.lane.b32.xlu1 %v3651_v63, %s3190_s14  ;;  %1785 = vrot.lane.b32.xlu2 %v3638_v49, %s3189_s13 }
 0x12a   : > { %v3666_v23 = vsel %vm1932_vm10, %v1889_v9, %v1640_v20  ;;  %v733_v20 = vld [vmem:[#allocation2 + $0x78] sm:$0xf] }
 0x12b   : > { %v3685_v40 = vpop.permute.xlu1 %1735  ;;  %v3687_v6 = vpop.permute.xlu2 %1770  ;;  %v947_v17 = vshrl.u32 %v733_v20, 16  ;;  %v950_v15 = vshll.u32 %v733_v20, 16 }
 0x12d   : > { %v1235_v45 = vrot.slane %v950_v15, 5  ;;  %v1237_v50 = vrot.slane %v947_v17, 4  ;;  %v949_v55 = vrot.slane %v947_v17, 7  ;;  %v1243_v17 = vrot.slane %v1241_v11, 5 }
 0x12f   : > { %1569 = vrot.lane.b32.xlu0 %v3124_v44, %s3183_s28  ;;  %v1238_v5 = vor.u32 %v1237_v50, %v1235_v45  ;;  %v952_v60 = vor.u32 %v950_v15, %v949_v55 }
 0x131   : > { %v3703_v37 = vpop.permute.xlu0 %1698  ;;  %1647 = vrot.lane.b32.xlu2 %v3651_v63, %s3184_s29  ;;  %1719 = vrot.lane.b32.xlu1 %v3124_v44, %s3185_s9  ;;  %v1222_v63 = vsel %vm3312_vm4, %v1220_v2, %v3663_v26  ;;  %v731_v26 = vld [vmem:[#allocation2 + $0x70] sm:$0xf]  ;;  %v940_v2 = vrot.slane %v938_v32, 7  ;;  %v1234_v32 = vrot.slane %v1233_v4, 4  ;;  %v1239_v48 = vrot.slane %v1238_v5, 4 }
 0x132   : > { %v1601_v38 = vunpack.c.l.b16 %v1222_v63  ;;  %v933_v1 = vshrl.u32 %v731_v26, 16  ;;  %v465_v63 = vpop.f32.mrf.mxu0 }
 0x133   : > { %v1673_v9 = vpop.permute.xlu1 %1672  ;;  %v3714_v10 = vpop.permute.xlu2 %1842  ;;  %v943_v22 = vor.u32 %v941_v52, %v940_v2  ;;  %v945_v28 = vrot.slane %v940_v2, 4  ;;  %v518_v31 = vmul.f32 %v3677_v61, %v465_v63  ;;  %v3125_v52 = vld [vmem:[#allocation2 + $0x74] sm:$0xff]  ;;  %v1244_v12 = vsel %vm3312_vm4, %v1239_v48, %v1243_v17 }
 0x134   : > { %v1627_v54 = vpack.c.b16 %v1602_v39, %v1601_v38  ;;  %v2965_v21 = vrot.slane %v933_v1, 11  ;;  %v1967_v30 = vsel %vm1965_vm11, %v1934_v14, %v1673_v9 }
 0x135   : > { %v551_v15 = vadd.f32 %v3692_v36, %v518_v31  ;;  %v1999_v9 = vsel %vm360_vm0, %v1967_v30, %v3622_v34  ;;  %v953_v47 = vsel %vm3437_vm7, %v945_v28, %v952_v60  ;;  %v1928_v34 = vsel %vm1883_vm9, %v3464_v41, %v3593_v42  ;;  %v737_v41 = vld [vmem:[#allocation2 + $0x88] sm:$0xf]  ;;  %v735_v28 = vld [vmem:[#allocation2 + $0x80] sm:$0xf] }
 0x136   : > { %v944_v46 = vsel %vm3437_vm7, %v2965_v21, %v943_v22  ;;  %v2032_v16 = vsel %vm2030_vm12, %v1999_v9, %v3605_v0  ;;  %v1444_v56 = vunpack.c.l.b16 %v953_v47  ;;  %v972_v21 = vshll.u32 %v737_v41, 16 }
 0x137   : > { %1682 = vrot.lane.b32.xlu0 %v3716_v18, %s3188_s12  ;;  %v955_v17 = vshrl.u32 %v735_v28, 16 }
 0x139   : > { %v3726_v29 = vpop.permute.xlu0 %1816  ;;  %1824 = vrot.lane.b32.xlu2 %v3124_v44, %s3186_s10  ;;  %1787 = vrot.lane.b32.xlu1 %v3716_v18, %s3189_s13  ;;  %v550_v44 = vadd.f32 %v3692_v36, %v517_v25  ;;  %v583_v25 = vmax.f32 %v551_v15, 0.0  ;;  %v738_v15 = vld [vmem:[#allocation2 + $0x8c] sm:$0xf] }
 0x13a   : > { %v468_v0 = vpop.f32.mrf.mxu0 }
 0x13b   : > { %v3733_v51 = vpop.permute.xlu1 %1561  ;;  %v3735_v53 = vpop.permute.xlu2 %1737  ;;  %v582_v3 = vmax.f32 %v550_v44, 0.0  ;;  %v658_v44 = vpack.c.bf16 %v583_v25, %v583_v25 }
 0x13d   : > { %v657_v20 = vpack.c.bf16 %v582_v3, %v582_v3  ;;  %690 = vst.msk [vmem:[#allocation2 + $0xa8] sm:$0xf] %vm596_vm1, %v658_v44  ;;  %v519_v3 = vmul.f32 %v3677_v61, %v468_v0 }
 0x13f   : > { %1859 = vrot.lane.b32.xlu0 %v1627_v54, %s3190_s14  ;;  %689 = vst.msk [vmem:[#allocation2 + $0xa4] sm:$0xf] %vm596_vm1, %v657_v20  ;;  %v969_v20 = vshrl.u32 %v737_v41, 16  ;;  %v552_v60 = vadd.f32 %v3692_v36, %v519_v3 }
 0x141   : > { %v3743_v19 = vpop.permute.xlu0 %1875  ;;  %1754 = vrot.lane.b32.xlu2 %v1627_v54, %s3187_s11  ;;  %1649 = vrot.lane.b32.xlu1 %v1627_v54, %s3184_s29  ;;  %v1443_v54 = vunpack.c.l.b16 %v944_v46 }
 0x143   : > { %v1675_v38 = vpop.permute.xlu1 %1674  ;;  %v1780_v39 = vpop.permute.xlu2 %1779  ;;  %v3781_v11 = vpack.c.b16 %v1444_v56, %v1443_v54 }
 0x144   : > { %v1969_v13 = vsel %vm1965_vm11, %v3666_v23, %v1675_v38  ;;  %v1236_v23 = vsel %vm3312_vm4, %v1234_v32, %v1235_v45  ;;  %v2065_v58 = vsel %vm2063_vm13, %v2032_v16, %v1780_v39  ;;  %v1604_v45 = vunpack.c.l.b16 %v1244_v12 }
 0x145   : > { %v3762_v26 = vsel %vm360_vm0, %v1969_v13, %v3649_v62  ;;  %v736_v62 = vld [vmem:[#allocation2 + $0x84] sm:$0xf]  ;;  %v1603_v42 = vunpack.c.l.b16 %v1236_v23  ;;  %v2098_v14 = vsel %vm2096_vm14, %v2065_v58, %v3726_v29  ;;  %v584_v32 = vmax.f32 %v552_v60, 0.0  ;;  %v470_v13 = vpop.f32.mrf.mxu0 }
 0x146   : > { %v960_v2 = vshrl.u32 %v736_v62, 16  ;;  %v963_v55 = vshll.u32 %v736_v62, 16  ;;  %v1249_v38 = vrot.slane %v972_v21, 5  ;;  %v1251_v39 = vrot.slane %v969_v20, 4 }
 0x147   : > { %1721 = vrot.lane.b32.xlu0 %v3125_v52, %s3185_s9  ;;  %v1628_v63 = vpack.c.b16 %v1604_v45, %v1603_v42  ;;  %v659_v9 = vpack.c.bf16 %v584_v32, %v584_v32  ;;  %v520_v47 = vmul.f32 %v3677_v61, %v470_v13  ;;  %v2966_v23 = vrot.slane %v955_v17, 11  ;;  %v3126_v45 = vld [vmem:[#allocation2 + $0x84] sm:$0xff] }
 0x148   : > { %v1245_v30 = vrot.slane %v960_v2, 4  ;;  %v1246_v31 = vrot.slane %v963_v55, 5  ;;  %v962_v29 = vrot.slane %v960_v2, 7  ;;  %v1252_v16 = vor.u32 %v1251_v39, %v1249_v38 }
 0x149   : > { %v1666_v50 = vpop.permute.xlu0 %1665  ;;  %1571 = vrot.lane.b32.xlu2 %v3125_v52, %s3183_s28  ;;  %1826 = vrot.lane.b32.xlu1 %v3125_v52, %s3186_s10  ;;  %v971_v52 = vrot.slane %v969_v20, 7  ;;  %691 = vst.msk [vmem:[#allocation2 + $0xb4] sm:$0xf] %vm596_vm1, %v659_v9  ;;  %v553_v62 = vadd.f32 %v3692_v36, %v520_v47  ;;  %v739_v9 = vld [vmem:[#allocation2 + $0x90] sm:$0xf] }
 0x14a   : > { %v1962_v1 = vsel %vm1932_vm10, %v1928_v34, %v1666_v50  ;;  %v1247_v46 = vor.u32 %v1246_v31, %v1245_v30  ;;  %v965_v12 = vor.u32 %v963_v55, %v962_v29  ;;  %v1255_v50 = vshll.u32 %v738_v15, 16  ;;  %v741_v15 = vld [vmem:[#allocation2 + $0x98] sm:$0xf] }
 0x14b   : > { %v1852_v4 = vpop.permute.xlu1 %1851  ;;  %v3779_v5 = vpop.permute.xlu2 %1641  ;;  %v967_v56 = vrot.slane %v962_v29, 4  ;;  %v974_v44 = vor.u32 %v972_v21, %v971_v52  ;;  %v585_v41 = vmax.f32 %v553_v62, 0.0  ;;  %v1253_v2 = vrot.slane %v1252_v16, 4  ;;  %v740_v52 = vld [vmem:[#allocation2 + $0x94] sm:$0xf] }
 0x14c   : > { %v2131_v22 = vsel %vm2129_vm15, %v2098_v14, %v1852_v4  ;;  %v1248_v0 = vrot.slane %v1247_v46, 4  ;;  %v966_v55 = vsel %vm3437_vm7, %v2966_v23, %v965_v12  ;;  %v1257_v3 = vrot.slane %v1255_v50, 5 }
 0x14d   : > { %3064 = vmatmul.msk.bf16.vlgmr.msra.gmra.mxu1 %vm2198_vm2, %v2131_v22  ;;  %v660_v4 = vpack.c.bf16 %v585_v41, %v585_v41  ;;  %v1445_v22 = vunpack.c.l.b16 %v966_v55  ;;  %v982_v46 = vshrl.u32 %v740_v52, 16  ;;  %v985_v47 = vshll.u32 %v740_v52, 16 }
 0x14e   : > { %v1250_v60 = vsel %vm3312_vm4, %v1248_v0, %v1249_v38  ;;  %v1258_v30 = vsel %vm3312_vm4, %v1253_v2, %v1257_v3 }
 0x14f   : > { %1789 = vrot.lane.b32.xlu0 %v3781_v11, %s3189_s13  ;;  %692 = vst.msk [vmem:[#allocation2 + $0xb8] sm:$0xf] %vm596_vm1, %v660_v4  ;;  %v1605_v29 = vunpack.c.l.b16 %v1250_v60  ;;  %v1606_v39 = vunpack.c.l.b16 %v1258_v30  ;;  %v1260_v0 = vrot.slane %v985_v47, 5 }
 0x151   : > { %v3790_v48 = vpop.permute.xlu0 %1746  ;;  %1756 = vrot.lane.b32.xlu1 %v1628_v63, %s3187_s11  ;;  %1684 = vrot.lane.b32.xlu2 %v3781_v11, %s3188_s12  ;;  %v1629_v50 = vpack.c.b16 %v1606_v39, %v1605_v29  ;;  %v3127_v39 = vld [vmem:[#allocation2 + $0x94] sm:$0xff] }
 0x153   : > { %v1701_v25 = vpop.permute.xlu1 %1700  ;;  %v3797_v34 = vpop.permute.xlu2 %1818 }
 0x154   : > { %v1995_v54 = vsel %vm1965_vm11, %v1962_v1, %v1701_v25  ;;  %v975_v1 = vsel %vm3437_vm7, %v967_v56, %v974_v44  ;;  %v991_v25 = vshrl.u32 %v741_v15, 16  ;;  %v994_v56 = vshll.u32 %v741_v15, 16 }
 0x155   : > { %v3804_v58 = vsel %vm360_vm0, %v1995_v54, %v3735_v53  ;;  %v473_v53 = vpop.f32.mrf.mxu0  ;;  %v1446_v28 = vunpack.c.l.b16 %v975_v1  ;;  %v977_v54 = vshrl.u32 %v739_v9, 16  ;;  %v984_v44 = vrot.slane %v982_v46, 7 }
 0x156   : > { %v521_v14 = vmul.f32 %v3677_v61, %v473_v53  ;;  %v993_v62 = vrot.slane %v991_v25, 7  ;;  %v1263_v3 = vrot.slane %v994_v56, 5  ;;  %v1265_v4 = vrot.slane %v991_v25, 4 }
 0x157   : > { %1651 = vrot.lane.b32.xlu0 %v1628_v63, %s3184_s29  ;;  %v3828_v17 = vpack.c.b16 %v1446_v28, %v1445_v22  ;;  %v2967_v1 = vrot.slane %v977_v54, 11  ;;  %v987_v53 = vor.u32 %v985_v47, %v984_v44  ;;  %v742_v28 = vld [vmem:[#allocation2 + $0x9c] sm:$0xf]  ;;  %v744_v47 = vld [vmem:[#allocation2 + $0xa4] sm:$0xf] }
 0x158   : > { %v996_v22 = vor.u32 %v994_v56, %v993_v62  ;;  %v1269_v52 = vshll.u32 %v742_v28, 16  ;;  %v745_v54 = vld [vmem:[#allocation2 + $0xa8] sm:$0xf] }
 0x159   : > { %v3806_v42 = vpop.permute.xlu0 %1805  ;;  %1861 = vrot.lane.b32.xlu2 %v1628_v63, %s3190_s14  ;;  %1573 = vrot.lane.b32.xlu1 %v3126_v45, %s3183_s28  ;;  %v554_v63 = vadd.f32 %v3692_v36, %v521_v14  ;;  %v989_v14 = vrot.slane %v984_v44, 4  ;;  %v988_v9 = vsel %vm3437_vm7, %v2967_v1, %v987_v53  ;;  %v1007_v1 = vshll.u32 %v744_v47, 16 }
 0x15a   : > { %v1271_v62 = vrot.slane %v1269_v52, 5 }
 0x15b   : > { %v3816_v20 = vpop.permute.xlu1 %1713  ;;  %v3818_v21 = vpop.permute.xlu2 %1748  ;;  %v586_v31 = vmax.f32 %v554_v63, 0.0  ;;  %v2034_v63 = vsel %vm2030_vm12, %v3762_v26, %v3790_v48  ;;  %v1447_v48 = vunpack.c.l.b16 %v988_v9 }
 0x15d   : > { %v661_v13 = vpack.c.bf16 %v586_v31, %v586_v31  ;;  %v475_v38 = vpop.f32.mrf.mxu0 }
 0x15e   : > { %v522_v23 = vmul.f32 %v3677_v61, %v475_v38  ;;  %v1266_v38 = vor.u32 %v1265_v4, %v1263_v3  ;;  %v1013_v4 = vshrl.u32 %v745_v54, 16 }
 0x15f   : > { %1828 = vrot.lane.b32.xlu0 %v3126_v45, %s3186_s10  ;;  %693 = vst.msk [vmem:[#allocation2 + $0xc4] sm:$0xf] %vm596_vm1, %v661_v13  ;;  %v997_v13 = vsel %vm3437_vm7, %v989_v14, %v996_v22 }
 0x160   : > { %v555_v41 = vadd.f32 %v3692_v36, %v522_v23  ;;  %v1448_v23 = vunpack.c.l.b16 %v997_v13  ;;  %v1267_v44 = vrot.slane %v1266_v38, 4  ;;  %v1274_v38 = vrot.slane %v1007_v1, 5 }
 0x161   : > { %v3826_v32 = vpop.permute.xlu0 %1563  ;;  %1723 = vrot.lane.b32.xlu2 %v3126_v45, %s3185_s9  ;;  %1686 = vrot.lane.b32.xlu1 %v3828_v17, %s3188_s12  ;;  %v1259_v45 = vrot.slane %v982_v46, 4 }
 0x162   : > { %v587_v2 = vmax.f32 %v555_v41, 0.0  ;;  %v743_v41 = vld [vmem:[#allocation2 + $0xa0] sm:$0xf]  ;;  %v3871_v22 = vpack.c.b16 %v1448_v23, %v1447_v48 }
 0x163   : > { %v3835_v12 = vpop.permute.xlu1 %1877  ;;  %v3837_v16 = vpop.permute.xlu2 %1565  ;;  %v1261_v30 = vor.u32 %v1260_v0, %v1259_v45  ;;  %v1004_v0 = vshrl.u32 %v744_v47, 16  ;;  %v999_v28 = vshrl.u32 %v743_v41, 16 }
 0x164   : > { %v662_v60 = vpack.c.bf16 %v587_v2, %v587_v2 }
 0x165   : > { %v1262_v46 = vrot.slane %v1261_v30, 4  ;;  %v478_v45 = vpop.f32.mrf.mxu0  ;;  %v1272_v30 = vsel %vm3312_vm4, %v1267_v44, %v1271_v62  ;;  %v1273_v13 = vrot.slane %v1004_v0, 4 }
 0x166   : > { %694 = vst.msk [vmem:[#allocation2 + $0xc8] sm:$0xf] %vm596_vm1, %v662_v60  ;;  %v523_v2 = vmul.f32 %v3677_v61, %v478_v45  ;;  %v1006_v60 = vrot.slane %v1004_v0, 7  ;;  %v1608_v47 = vunpack.c.l.b16 %v1272_v30 }
 0x167   : > { %1758 = vrot.lane.b32.xlu0 %v1629_v50, %s3187_s11  ;;  %v1275_v41 = vor.u32 %v1274_v38, %v1273_v13 }
 0x168   : > { %v1011_v23 = vrot.slane %v1006_v60, 4 }
 0x169   : > { %v3841_v55 = vpop.permute.xlu0 %1676  ;;  %1863 = vrot.lane.b32.xlu1 %v1629_v50, %s3190_s14  ;;  %1791 = vrot.lane.b32.xlu2 %v3828_v17, %s3189_s13 }
 0x16b   : > { %v1782_v31 = vpop.permute.xlu1 %1781  ;;  %v3850_v29 = vpop.permute.xlu2 %1678 }
 0x16c   : > { %v2067_v15 = vsel %vm2063_vm13, %v2034_v63, %v1782_v31  ;;  %v1015_v63 = vrot.slane %v1013_v4, 7  ;;  %v1016_v31 = vshll.u32 %v745_v54, 16 }
 0x16d   : > { %v2100_v26 = vsel %vm2096_vm14, %v2067_v15, %v3797_v34  ;;  %v1264_v34 = vsel %vm3312_vm4, %v1262_v46, %v1263_v3  ;;  %v1892_v3 = vsel %vm1883_vm9, %v3497_v8, %v3733_v51  ;;  %v1279_v8 = vrot.slane %v1013_v4, 4  ;;  %v480_v51 = vpop.f32.mrf.mxu0 }
 0x16e   : > { %v1938_v15 = vsel %vm1932_vm10, %v1892_v3, %v3779_v5  ;;  %v1607_v9 = vunpack.c.l.b16 %v1264_v34  ;;  %v1018_v54 = vor.u32 %v1016_v31, %v1015_v63  ;;  %v746_v5 = vld [vmem:[#allocation2 + $0xac] sm:$0xf]  ;;  %v524_v62 = vmul.f32 %v3677_v61, %v480_v51 }
 0x16f   : > { %1575 = vrot.lane.b32.xlu0 %v3127_v39, %s3183_s28  ;;  %v1971_v44 = vsel %vm1965_vm11, %v1938_v15, %v3841_v55  ;;  %v1276_v3 = vrot.slane %v1275_v41, 4 }
 0x170   : > { %v1630_v34 = vpack.c.b16 %v1608_v47, %v1607_v9  ;;  %v557_v55 = vadd.f32 %v3692_v36, %v524_v62  ;;  %v2003_v4 = vsel %vm360_vm0, %v1971_v44, %v3816_v20  ;;  %v3128_v47 = vld [vmem:[#allocation2 + $0xa4] sm:$0xff]  ;;  %v748_v62 = vld [vmem:[#allocation2 + $0xb4] sm:$0xf] }
 0x171   : > { %v1854_v25 = vpop.permute.xlu0 %1853  ;;  %1653 = vrot.lane.b32.xlu2 %v1629_v50, %s3184_s29  ;;  %1725 = vrot.lane.b32.xlu1 %v3127_v39, %s3185_s9  ;;  %v556_v50 = vadd.f32 %v3692_v36, %v523_v2 }
 0x172   : > { %v2133_v56 = vsel %vm2129_vm15, %v2100_v26, %v1854_v25  ;;  %v2968_v25 = vrot.slane %v999_v28, 11  ;;  %v1009_v26 = vor.u32 %v1007_v1, %v1006_v60  ;;  %v1019_v28 = vsel %vm3437_vm7, %v1011_v23, %v1018_v54 }
 0x173   : > { %3065 = vmatmul.msk.bf16.gmra.mxu1 %vm2198_vm2, %v2133_v56  ;;  %v3867_v53 = vpop.permute.xlu1 %1643  ;;  %v3869_v14 = vpop.permute.xlu2 %1855  ;;  %v588_v52 = vmax.f32 %v556_v50, 0.0  ;;  %v1277_v56 = vrot.slane %v1016_v31, 5  ;;  %v1283_v50 = vshll.u32 %v746_v5, 16  ;;  %v589_v30 = vmax.f32 %v557_v55, 0.0 }
 0x174   : > { %v1010_v1 = vsel %vm3437_vm7, %v2968_v25, %v1009_v26  ;;  %v1450_v9 = vunpack.c.l.b16 %v1019_v28  ;;  %v1029_v28 = vshll.u32 %v748_v62, 16 }
 0x175   : > { %v663_v48 = vpack.c.bf16 %v588_v52, %v588_v52  ;;  %v493_v45 = vpop.f32.mrf.mxu3  ;;  %v1280_v60 = vor.u32 %v1279_v8, %v1277_v56  ;;  %v1449_v31 = vunpack.c.l.b16 %v1010_v1  ;;  %v2036_v52 = vsel %vm2030_vm12, %v2003_v4, %v3818_v21 }
 0x176   : > { %v664_v13 = vpack.c.bf16 %v589_v30, %v589_v30  ;;  %v1285_v26 = vrot.slane %v1283_v50, 5  ;;  %v1278_v5 = vsel %vm3312_vm4, %v1276_v3, %v1277_v56 }
 0x177   : > { %1688 = vrot.lane.b32.xlu0 %v3871_v22, %s3188_s12  ;;  %695 = vst.msk [vmem:[#allocation2 + $0xd4] sm:$0xf] %vm596_vm1, %v663_v48  ;;  %v1281_v25 = vrot.slane %v1280_v60, 4  ;;  %v3918_v44 = vpack.c.b16 %v1450_v9, %v1449_v31  ;;  %v1609_v55 = vunpack.c.l.b16 %v1278_v5 }
 0x178   : > { %696 = vst.msk [vmem:[#allocation2 + $0xd8] sm:$0xf] %vm596_vm1, %v664_v13  ;;  %v1288_v13 = vrot.slane %v1029_v28, 5 }
 0x179   : > { %v3883_v46 = vpop.permute.xlu0 %1715  ;;  %1830 = vrot.lane.b32.xlu2 %v3127_v39, %s3186_s10  ;;  %1793 = vrot.lane.b32.xlu1 %v3871_v22, %s3189_s13  ;;  %v529_v39 = vmul.f32 %v3677_v61, %v493_v45  ;;  %v749_v45 = vld [vmem:[#allocation2 + $0xb8] sm:$0xf] }
 0x17a   : > { %v1035_v60 = vshrl.u32 %v749_v45, 16 }
 0x17b   : > { %v1821_v0 = vpop.permute.xlu1 %1820  ;;  %v3892_v2 = vpop.permute.xlu2 %1717  ;;  %v562_v63 = vadd.f32 %v3692_v36, %v529_v39  ;;  %v1026_v39 = vshrl.u32 %v748_v62, 16 }
 0x17c   : > { %v1037_v31 = vrot.slane %v1035_v60, 7 }
 0x17d   : > { %v594_v38 = vmax.f32 %v562_v63, 0.0  ;;  %v495_v54 = vpop.f32.mrf.mxu3  ;;  %v1038_v63 = vshll.u32 %v749_v45, 16  ;;  %v1287_v9 = vrot.slane %v1026_v39, 4 }
 0x17e   : > { %v530_v41 = vmul.f32 %v3677_v61, %v495_v54  ;;  %v1028_v61 = vrot.slane %v1026_v39, 7  ;;  %v3941_v54 = vld [vmem:[#allocation2 + $0xc8] sm:$0xf] }
 0x17f   : > { %1865 = vrot.lane.b32.xlu0 %v1630_v34, %s3190_s14  ;;  %v669_v23 = vpack.c.bf16 %v594_v38, %v594_v38  ;;  %v1289_v62 = vor.u32 %v1288_v13, %v1287_v9 }
 0x180   : > { %v563_v1 = vadd.f32 %v3692_v36, %v530_v41 }
 0x181   : > { %v1784_v15 = vpop.permute.xlu0 %1783  ;;  %1760 = vrot.lane.b32.xlu2 %v1630_v34, %s3187_s11  ;;  %1832 = vrot.lane.b32.xlu1 %v3128_v47, %s3186_s10  ;;  %701 = vst.msk [vmem:[#allocation2 + $0x104] sm:$0xf] %vm596_vm1, %v669_v23  ;;  %v1040_v23 = vor.u32 %v1038_v63, %v1037_v31 }
 0x182   : > { %v2069_v20 = vsel %vm2063_vm13, %v2036_v52, %v1784_v15  ;;  %v595_v50 = vmax.f32 %v563_v1, 0.0 }
 0x183   : > { %v2102_v48 = vsel %vm2096_vm14, %v2069_v20, %v1821_v0  ;;  %v3914_v8 = vpop.permute.xlu1 %1750  ;;  %v3916_v51 = vpop.permute.xlu2 %1785  ;;  %v747_v0 = vld [vmem:[#allocation2 + $0xb0] sm:$0xf]  ;;  %v1031_v20 = vor.u32 %v1029_v28, %v1028_v61  ;;  %v1060_v28 = vshll.u32 %v3941_v54, 16 }
 0x184   : > { %v2135_v21 = vsel %vm2129_vm15, %v2102_v48, %v3869_v14  ;;  %v1286_v14 = vsel %vm3312_vm4, %v1281_v25, %v1285_v26  ;;  %v1021_v30 = vshrl.u32 %v747_v0, 16  ;;  %v670_v3 = vpack.c.bf16 %v595_v50, %v595_v50  ;;  %v750_v25 = vld [vmem:[#allocation2 + $0xbc] sm:$0xf] }
 0x185   : > { %3066 = vmatmul.msk.bf16.gmra.mxu1 %vm2198_vm2, %v2135_v21  ;;  %v1610_v56 = vunpack.c.l.b16 %v1286_v14  ;;  %v1291_v26 = vrot.slane %v1038_v63, 5  ;;  %v1293_v48 = vrot.slane %v1035_v60, 4  ;;  %v3939_v21 = vld [vmem:[#allocation2 + $0xc4] sm:$0xf]  ;;  %v1297_v41 = vshll.u32 %v750_v25, 16 }
 0x186   : > { %702 = vst.msk [vmem:[#allocation2 + $0x108] sm:$0xf] %vm596_vm1, %v670_v3  ;;  %v2969_v38 = vrot.slane %v1021_v30, 11  ;;  %v1895_v14 = vsel %vm1883_vm9, %v3558_v33, %v3826_v32  ;;  %v1048_v1 = vshrl.u32 %v3939_v21, 16  ;;  %v1051_v39 = vshll.u32 %v3939_v21, 16 }
 0x187   : > { %1795 = vrot.lane.b32.xlu0 %v3918_v44, %s3189_s13  ;;  %v1631_v15 = vpack.c.b16 %v1610_v56, %v1609_v55  ;;  %v1294_v0 = vor.u32 %v1293_v48, %v1291_v26  ;;  %v1057_v56 = vshrl.u32 %v3941_v54, 16  ;;  %v1940_v33 = vsel %vm1932_vm10, %v1895_v14, %v3867_v53 }
 0x188   : > { %v1032_v45 = vsel %vm3437_vm7, %v2969_v38, %v1031_v20  ;;  %v1299_v50 = vrot.slane %v1297_v41, 5  ;;  %v1301_v31 = vrot.slane %v1048_v1, 4  ;;  %v1973_v3 = vsel %vm1965_vm11, %v1940_v33, %v3850_v29  ;;  %v754_v20 = vld [vmem:[#allocation2 + $0xcc] sm:$0xf] }
 0x189   : > { %v3929_v4 = vpop.permute.xlu0 %1645  ;;  %1655 = vrot.lane.b32.xlu2 %v1630_v34, %s3184_s29  ;;  %1577 = vrot.lane.b32.xlu1 %v3128_v47, %s3183_s28  ;;  %v1033_v34 = vrot.slane %v1028_v61, 4  ;;  %v1451_v30 = vunpack.c.l.b16 %v1032_v45  ;;  %v1295_v63 = vrot.slane %v1294_v0, 4  ;;  %v1302_v9 = vrot.slane %v1051_v39, 5 }
 0x18a   : > { %v1305_v53 = vrot.slane %v1060_v28, 5  ;;  %v1307_v13 = vrot.slane %v1057_v56, 4  ;;  %v2005_v38 = vsel %vm360_vm0, %v1973_v3, %v3883_v46  ;;  %v1050_v33 = vrot.slane %v1048_v1, 7 }
 0x18b   : > { %v3933_v52 = vpop.permute.xlu1 %1567  ;;  %v3935_v36 = vpop.permute.xlu2 %1647  ;;  %v1041_v55 = vsel %vm3437_vm7, %v1033_v34, %v1040_v23  ;;  %v2038_v25 = vsel %vm2030_vm12, %v2005_v38, %v3914_v8  ;;  %v1300_v29 = vsel %vm3312_vm4, %v1295_v63, %v1299_v50  ;;  %v1303_v21 = vor.u32 %v1302_v9, %v1301_v31  ;;  %v751_v8 = vld [vmem:[#allocation2 + $0xc0] sm:$0xf] }
 0x18c   : > { %v1452_v61 = vunpack.c.l.b16 %v1041_v55  ;;  %v1308_v54 = vor.u32 %v1307_v13, %v1305_v53  ;;  %v2071_v46 = vsel %vm2063_vm13, %v2038_v25, %v3916_v51  ;;  %v1612_v55 = vunpack.c.l.b16 %v1300_v29  ;;  %v756_v25 = vld [vmem:[#allocation2 + $0xd4] sm:$0xf] }
 0x18d   : > { %v1304_v51 = vrot.slane %v1303_v21, 4  ;;  %v1053_v9 = vor.u32 %v1051_v39, %v1050_v33  ;;  %vm2773_vm1 = vcmask 257024  }
 0x18e   : > { %v3972_v34 = vpack.c.b16 %v1452_v61, %v1451_v30  ;;  %v1043_v30 = vshrl.u32 %v751_v8, 16  ;;  %v1059_v61 = vrot.slane %v1057_v56, 7  ;;  %v1055_v56 = vrot.slane %v1050_v33, 4 }
 0x18f   : > { %1762 = vrot.lane.b32.xlu0 %v1631_v15, %s3187_s11  ;;  %v1306_v1 = vsel %vm3312_vm4, %v1304_v51, %v1305_v53  ;;  %v1898_v53 = vsel %vm1883_vm9, %v3595_v43, %v3837_v16 }
 0x190   : > { %v2970_v3 = vrot.slane %v1043_v30, 11  ;;  %v1613_v29 = vunpack.c.l.b16 %v1306_v1 }
 0x191   : > { %v1823_v5 = vpop.permute.xlu0 %1822  ;;  %1727 = vrot.lane.b32.xlu2 %v3128_v47, %s3185_s9  ;;  %1690 = vrot.lane.b32.xlu1 %v3918_v44, %s3188_s12  ;;  %v1290_v47 = vrot.slane %v1289_v62, 4  ;;  %v1311_v62 = vshll.u32 %v754_v20, 16  ;;  %v1062_v20 = vor.u32 %v1060_v28, %v1059_v61  ;;  %v1073_v28 = vshll.u32 %v756_v25, 16 }
 0x192   : > { %v2104_v41 = vsel %vm2096_vm14, %v2071_v46, %v1823_v5  ;;  %v1054_v39 = vsel %vm3437_vm7, %v2970_v3, %v1053_v9  ;;  %v1070_v46 = vshrl.u32 %v756_v25, 16 }
 0x193   : > { %v3959_v32 = vpop.permute.xlu1 %1680  ;;  %v3961_v60 = vpop.permute.xlu2 %1824  ;;  %v1292_v23 = vsel %vm3312_vm4, %v1290_v47, %v1291_v26  ;;  %v3986_v26 = vld [vmem:[#allocation2 + $0xb4] sm:$0xff]  ;;  %v1309_v47 = vrot.slane %v1308_v54, 4  ;;  %v1313_v50 = vrot.slane %v1311_v62, 5  ;;  %v755_v54 = vld [vmem:[#allocation2 + $0xd0] sm:$0xf]  ;;  %v1942_v62 = vsel %vm1932_vm10, %v1898_v53, %v3929_v4 }
 0x194   : > { %v1611_v0 = vunpack.c.l.b16 %v1292_v23  ;;  %v757_v23 = vld [vmem:[#allocation2 + $0xd8] sm:$0xf]  ;;  %v1063_v43 = vsel %vm3437_vm7, %v1055_v56, %v1062_v20  ;;  %v1065_v16 = vshrl.u32 %v755_v54, 16  ;;  %v1453_v4 = vunpack.c.l.b16 %v1054_v39 }
 0x195   : > { %v1314_v31 = vsel %vm3312_vm4, %v1309_v47, %v1313_v50  ;;  %v1079_v8 = vshrl.u32 %v757_v23, 16  ;;  %v1315_v47 = vrot.slane %v1070_v46, 4  ;;  %v1316_v50 = vrot.slane %v1073_v28, 5 }
 0x196   : > { %v3994_v63 = vpack.c.b16 %v1612_v55, %v1611_v0  ;;  %v1614_v21 = vunpack.c.l.b16 %v1314_v31  ;;  %v1072_v55 = vrot.slane %v1070_v46, 7  ;;  %v4035_v31 = vld [vmem:[#allocation2 + $0xc4] sm:$0xff]  ;;  %v2971_v3 = vrot.slane %v1065_v16, 11 }
 0x197   : > { %1657 = vrot.lane.b32.xlu0 %v1631_v15, %s3184_s29  ;;  %v1081_v33 = vrot.slane %v1079_v8, 7  ;;  %v1321_v56 = vrot.slane %v1079_v8, 4  ;;  %v1317_v53 = vor.u32 %v1316_v50, %v1315_v47  ;;  %v767_v47 = vld [vmem:[#allocation2 + $0x100] sm:$0xf] }
 0x198   : > { %v4023_v0 = vpack.c.b16 %v1614_v21, %v1613_v29  ;;  %v1077_v25 = vrot.slane %v1072_v55, 4  ;;  %v758_v29 = vld [vmem:[#allocation2 + $0xdc] sm:$0xf] }
 0x199   : > { %v3970_v48 = vpop.permute.xlu0 %1752  ;;  %1867 = vrot.lane.b32.xlu2 %v1631_v15, %s3190_s14  ;;  %1797 = vrot.lane.b32.xlu1 %v3972_v34, %s3189_s13  ;;  %v1325_v8 = vshll.u32 %v758_v29, 16 }
 0x19b   : > { %v1858_v14 = vpop.permute.xlu1 %1857  ;;  %v3984_v45 = vpop.permute.xlu2 %1754 }
 0x19c   : > { %v2137_v15 = vsel %vm2129_vm15, %v2104_v41, %v1858_v14  ;;  %v1975_v41 = vsel %vm1965_vm11, %v1942_v62, %v3959_v32  ;;  %v1454_v32 = vunpack.c.l.b16 %v1063_v43 }
 0x19d   : > { %3067 = vmatmul.msk.bf16.gmra.mxu1 %vm2198_vm2, %v2137_v15  ;;  %v1082_v15 = vshll.u32 %v757_v23, 16  ;;  %v2007_v51 = vsel %vm360_vm0, %v1975_v41, %v3892_v2  ;;  %v1075_v2 = vor.u32 %v1073_v28, %v1072_v55  ;;  %v1318_v55 = vrot.slane %v1317_v53, 4 }
 0x19e   : > { %v2040_v30 = vsel %vm2030_vm12, %v2007_v51, %v3970_v48  ;;  %v4042_v54 = vpack.c.b16 %v1454_v32, %v1453_v4  ;;  %v1327_v4 = vrot.slane %v1325_v8, 5  ;;  %v768_v51 = vld [vmem:[#allocation2 + $0x104] sm:$0xf]  ;;  %v769_v32 = vld [vmem:[#allocation2 + $0x108] sm:$0xf] }
 0x19f   : > { %1729 = vrot.lane.b32.xlu0 %v3986_v26, %s3185_s9  ;;  %v1319_v9 = vrot.slane %v1082_v15, 5  ;;  %v1084_v23 = vor.u32 %v1082_v15, %v1081_v33  ;;  %v1076_v46 = vsel %vm3437_vm7, %v2971_v3, %v1075_v2  ;;  %v1372_v3 = vshrl.u32 %v769_v32, 16  ;;  %v770_v8 = vld [vmem:[#allocation2 + $0x10c] sm:$0xf] }
 0x1a0   : > { %v1455_v16 = vunpack.c.l.b16 %v1076_v46  ;;  %v1358_v2 = vshrl.u32 %v767_v47, 16 }
 0x1a1   : > { %v3992_v5 = vpop.permute.xlu0 %1569  ;;  %1834 = vrot.lane.b32.xlu2 %v3986_v26, %s3186_s10  ;;  %1764 = vrot.lane.b32.xlu1 %v3994_v63, %s3187_s11  ;;  %v1322_v39 = vor.u32 %v1321_v56, %v1319_v9  ;;  %v1085_v28 = vsel %vm3437_vm7, %v1077_v25, %v1084_v23  ;;  %v4069_v56 = vld [vmem:[#allocation2 + $0xd4] sm:$0xff]  ;;  %v1366_v25 = vshll.u32 %v768_v51, 16  ;;  %v1375_v23 = vshll.u32 %v769_v32, 16 }
 0x1a2   : > { %v1456_v15 = vunpack.c.l.b16 %v1085_v28 }
 0x1a3   : > { %v4004_v13 = vpop.permute.xlu1 %1719  ;;  %v4006_v38 = vpop.permute.xlu2 %1571  ;;  %v1323_v33 = vrot.slane %v1322_v39, 4 }
 0x1a7   : > { %1869 = vrot.lane.b32.xlu0 %v3994_v63, %s3190_s14 }
 0x1a9   : > { %v4019_v14 = vpop.permute.xlu0 %1682  ;;  %1692 = vrot.lane.b32.xlu2 %v3972_v34, %s3188_s12  ;;  %1661 = vrot.lane.b32.xlu1 %v4023_v0, %s3184_s29 }
 0x1ab   : > { %v1788_v61 = vpop.permute.xlu1 %1787  ;;  %v4033_v1 = vpop.permute.xlu2 %1684 }
 0x1ac   : > { %v2073_v20 = vsel %vm2063_vm13, %v2040_v30, %v1788_v61  ;;  %v1363_v61 = vshrl.u32 %v768_v51, 16 }
 0x1ad   : > { %v2106_v48 = vsel %vm2096_vm14, %v2073_v20, %v3961_v60  ;;  %v1901_v60 = vsel %vm1883_vm9, %v3638_v49, %v3933_v52  ;;  %v4065_v49 = vpack.c.b16 %v1456_v15, %v1455_v16  ;;  %v1320_v52 = vsel %vm3312_vm4, %v1318_v55, %v1319_v9 }
 0x1ae   : > { %v1944_v50 = vsel %vm1932_vm10, %v1901_v60, %v3935_v36  ;;  %v1328_v20 = vsel %vm3312_vm4, %v1323_v33, %v1327_v4  ;;  %v2438_v36 = vld [vmem:[%s4550_s3] sm:$0xf]  ;;  %v1365_v9 = vrot.slane %v1363_v61, 7  ;;  %v1379_v28 = vrot.slane %v1363_v61, 4 }
 0x1af   : > { %1581 = vrot.lane.b32.xlu0 %v4035_v31, %s3183_s28  ;;  %v1977_v29 = vsel %vm1965_vm11, %v1944_v50, %v4019_v14  ;;  %v1616_v46 = vunpack.c.l.b16 %v1328_v20  ;;  %v1380_v60 = vrot.slane %v1366_v25, 5  ;;  %v1383_v16 = vrot.slane %v1375_v23, 5 }
 0x1b0   : > { %v2009_v14 = vsel %vm360_vm0, %v1977_v29, %v4004_v13  ;;  %v1385_v15 = vrot.slane %v1372_v3, 4  ;;  %v2974_v55 = vrot.slane %v1358_v2, 11  ;;  %v1368_v33 = vor.u32 %v1366_v25, %v1365_v9 }
 0x1b1   : > { %v1860_v21 = vpop.permute.xlu0 %1859  ;;  %1799 = vrot.lane.b32.xlu2 %v4042_v54, %s3189_s13  ;;  %1871 = vrot.lane.b32.xlu1 %v4023_v0, %s3190_s14  ;;  %v1370_v4 = vrot.slane %v1365_v9, 4  ;;  %v2042_v32 = vsel %vm2030_vm12, %v2009_v14, %v3984_v45  ;;  %v1389_v50 = vshll.u32 %v770_v8, 16  ;;  %v1381_v13 = vor.u32 %v1380_v60, %v1379_v28  ;;  %v4119_v14 = vld [vmem:[%s4551_s4 + $0x2] ss:$0 sm:$0xff] }
 0x1b2   : > { %v2139_v62 = vsel %vm2129_vm15, %v2106_v48, %v1860_v21  ;;  %v1374_v21 = vrot.slane %v1372_v3, 7  ;;  %v2488_v48 = vsel %vm2231_vm8, %v2438_v36, 0  ;;  %v1386_v20 = vor.u32 %v1385_v15, %v1383_v16  ;;  %v4125_v15 = vld [vmem:[#allocation2 + $0x104] sm:$0xff] }
 0x1b3   : > { %3068 = vmatmul.msk.bf16.gmra.mxu1 %vm2198_vm2, %v2139_v62  ;;  %v4057_v41 = vpop.permute.xlu1 %1649  ;;  %v1862_v43 = vpop.permute.xlu2 %1861  ;;  %2497 = vmatpush.bf16.msra.mxu2 %v2488_v48  ;;  %v1615_v62 = vunpack.c.l.b16 %v1320_v52  ;;  %v1369_v2 = vsel %vm3437_vm7, %v2974_v55, %v1368_v33  ;;  %v1391_v29 = vrot.slane %v1389_v50, 5 }
 0x1b4   : > { %3147 = vmatpush.bf16.msra.mxu3 %v2488_v48  ;;  %v1377_v51 = vor.u32 %v1375_v23, %v1374_v21  ;;  %v1669_v9 = vunpack.c.l.b16 %v1369_v2  ;;  %v1382_v21 = vrot.slane %v1381_v13, 4  ;;  %v1387_v48 = vrot.slane %v1386_v20, 4 }
 0x1b5   : > { %v4092_v61 = vpack.c.b16 %v1616_v46, %v1615_v62 }
 0x1b6   : > { %v1378_v25 = vsel %vm3437_vm7, %v1370_v4, %v1377_v51  ;;  %v1384_v46 = vsel %vm3312_vm4, %v1382_v21, %v1383_v16  ;;  %v4133_v4 = vld [vmem:[%s4551_s4 + $0x3] ss:$0 sm:$0xff] }
 0x1b7   : > { %1836 = vrot.lane.b32.xlu0 %v4035_v31, %s3186_s10  ;;  %v1741_v16 = vunpack.c.l.b16 %v1384_v46 }
 0x1b9   : > { %v4063_v30 = vpop.permute.xlu0 %1721  ;;  %1696 = vrot.lane.b32.xlu2 %v4065_v49, %s3188_s12  ;;  %1583 = vrot.lane.b32.xlu1 %v4069_v56, %s3183_s28 }
 0x1bb   : > { %v1827_v53 = vpop.permute.xlu1 %1826  ;;  %v4083_v39 = vpop.permute.xlu2 %1723 }
 0x1bf   : > { %1733 = vrot.lane.b32.xlu0 %v4069_v56, %s3185_s9 }
 0x1c1   : > { %v1790_v47 = vpop.permute.xlu0 %1789  ;;  %1579 = vrot.lane.b32.xlu2 %v3986_v26, %s3183_s28  ;;  %1768 = vrot.lane.b32.xlu1 %v4092_v61, %s3187_s11  ;;  %v1670_v26 = vunpack.c.l.b16 %v1378_v25 }
 0x1c2   : > { %v2075_v52 = vsel %vm2063_vm13, %v2042_v32, %v1790_v47  ;;  %v1904_v47 = vsel %vm1883_vm9, %v3716_v18, %v3992_v5 }
 0x1c3   : > { %v2108_v3 = vsel %vm2096_vm14, %v2075_v52, %v1827_v53  ;;  %v1757_v23 = vpop.permute.xlu1 %1756  ;;  %v1792_v36 = vpop.permute.xlu2 %1791  ;;  %v1671_v62 = vpack.c.b16 %v1670_v26, %v1669_v9  ;;  %v1946_v50 = vsel %vm1932_vm10, %v1904_v47, %v4057_v41 }
 0x1c4   : > { %v2141_v45 = vsel %vm2129_vm15, %v2108_v3, %v1862_v43  ;;  %v1392_v43 = vsel %vm3312_vm4, %v1387_v48, %v1391_v29  ;;  %v1979_v18 = vsel %vm1965_vm11, %v1946_v50, %v4033_v1  ;;  %v773_v48 = vld [vmem:[#allocation2 + $0x118] sm:$0xf] }
 0x1c5   : > { %3069 = vmatmul.msk.bf16.gmra.mxu1 %vm2198_vm2, %v2141_v45  ;;  %v1742_v55 = vunpack.c.l.b16 %v1392_v43  ;;  %v2011_v41 = vsel %vm360_vm0, %v1979_v18, %v4063_v30  ;;  %v1411_v43 = vshll.u32 %v773_v48, 16  ;;  %v1907_v18 = vsel %vm1883_vm9, %v3781_v11, %v4006_v38 }
 0x1c7   : > { %1772 = vrot.lane.b32.xlu0 %v3550_v24, %s3187_s11  ;;  %v4135_v32 = vpack.c.b16 %v1742_v55, %v1741_v16 }
 0x1c9   : > { %v4107_v53 = vpop.permute.xlu0 %1651  ;;  %1663 = vrot.lane.b32.xlu2 %v4092_v61, %s3184_s29  ;;  %1807 = vrot.lane.b32.xlu1 %v1671_v62, %s3189_s13 }
 0x1ca   : > { %v2244_v28 = vpop.f32.mrf.mxu1 }
 0x1cb   : > { %v4121_v8 = vpop.permute.xlu1 %1573  ;;  %v4123_v60 = vpop.permute.xlu2 %1653  ;;  %v2325_v33 = vmul.f32 %v4119_v14, %v2244_v28  ;;  %v1408_v28 = vshrl.u32 %v773_v48, 16 }
 0x1cd   : > { %v2358_v13 = vadd.f32 %v4133_v4, %v2325_v33  ;;  %v1419_v33 = vrot.slane %v1411_v43, 5  ;;  %v1421_v50 = vrot.slane %v1408_v28, 4 }
 0x1cf   : > { %1844 = vrot.lane.b32.xlu0 %v4125_v15, %s3186_s10  ;;  %v2390_v25 = vmax.f32 %v2358_v13, 0.0 }
 0x1d1   : > { %v1829_v51 = vpop.permute.xlu0 %1828  ;;  %1879 = vrot.lane.b32.xlu2 %v4135_v32, %s3190_s14  ;;  %1659 = vrot.lane.b32.xlu1 %v3994_v63, %s3184_s29  ;;  %v2044_v63 = vsel %vm2030_vm12, %v2011_v41, %v1757_v23  ;;  %v772_v23 = vld [vmem:[#allocation2 + $0x114] sm:$0xf]  ;;  %v774_v41 = vld [vmem:[#allocation2 + $0x11c] sm:$0xf] }
 0x1d2   : > { %v2246_v52 = vpop.f32.mrf.mxu1  ;;  %v2077_v26 = vsel %vm2063_vm13, %v2044_v63, %v1792_v36  ;;  %v1402_v36 = vshll.u32 %v772_v23, 16 }
 0x1d3   : > { %v2326_v20 = vmul.f32 %v4119_v14, %v2246_v52  ;;  %v1687_v3 = vpop.permute.xlu1 %1686  ;;  %v4148_v2 = vpop.permute.xlu2 %1830  ;;  %v2110_v1 = vsel %vm2096_vm14, %v2077_v26, %v1829_v51  ;;  %v771_v51 = vld [vmem:[#allocation2 + $0x110] sm:$0xf] }
 0x1d4   : > { %v1416_v55 = vrot.slane %v1402_v36, 5  ;;  %v1394_v52 = vshrl.u32 %v771_v51, 16 }
 0x1d5   : > { %v2359_v5 = vadd.f32 %v4133_v4, %v2326_v20  ;;  %v1410_v20 = vrot.slane %v1408_v28, 7 }
 0x1d7   : > { %1694 = vrot.lane.b32.xlu0 %v4042_v54, %s3188_s12  ;;  %v2391_v45 = vmax.f32 %v2359_v5, 0.0 }
 0x1d9   : > { %v1759_v29 = vpop.permute.xlu0 %1758  ;;  %1766 = vrot.lane.b32.xlu2 %v4023_v0, %s3187_s11  ;;  %v2422_v9 = vpack.c.bf16 %v2391_v45, %v2390_v25  ;;  %1731 = vrot.lane.b32.xlu1 %v4035_v31, %s3185_s9  ;;  %v1399_v0 = vshrl.u32 %v772_v23, 16  ;;  %v1413_v45 = vor.u32 %v1411_v43, %v1410_v20  ;;  %v1425_v23 = vshll.u32 %v774_v41, 16 }
 0x1db   : > { %3080 = vmatmul.msk.bf16.vlgmr.msra.gmra.mxu2 %vm1883_vm9, %v2422_v9  ;;  %v1864_v21 = vpop.permute.xlu1 %1863  ;;  %v4165_v30 = vpop.permute.xlu2 %1760  ;;  %v1415_v16 = vrot.slane %v1399_v0, 4  ;;  %v1401_v13 = vrot.slane %v1399_v0, 7  ;;  %v1948_v9 = vsel %vm1932_vm10, %v1907_v18, %v4107_v53 }
 0x1dc   : > { %v2143_v46 = vsel %vm2129_vm15, %v2110_v1, %v1864_v21  ;;  %v1422_v21 = vor.u32 %v1421_v50, %v1419_v33  ;;  %v1981_v38 = vsel %vm1965_vm11, %v1948_v9, %v1687_v3 }
 0x1dd   : > { %3070 = vmatmul.msk.bf16.gmra.mxu1 %vm2198_vm2, %v2143_v46  ;;  %v1404_v63 = vor.u32 %v1402_v36, %v1401_v13  ;;  %v1406_v25 = vrot.slane %v1401_v13, 4  ;;  %v1417_v26 = vor.u32 %v1416_v55, %v1415_v16  ;;  %v2013_v53 = vsel %vm360_vm0, %v1981_v38, %v4083_v39 }
 0x1de   : > { %v1423_v28 = vrot.slane %v1422_v21, 4  ;;  %v1427_v16 = vrot.slane %v1425_v23, 5  ;;  %v2046_v7 = vsel %vm2030_vm12, %v2013_v53, %v1759_v29 }
 0x1df   : > { %1801 = vrot.lane.b32.xlu0 %v4065_v49, %s3189_s13  ;;  %v1414_v11 = vsel %vm3437_vm7, %v1406_v25, %v1413_v45  ;;  %v1418_v43 = vrot.slane %v1417_v26, 4 }
 0x1e0   : > { %v1777_v0 = vunpack.c.l.b16 %v1414_v11  ;;  %v1428_v29 = vsel %vm3312_vm4, %v1423_v28, %v1427_v16 }
 0x1e1   : > { %v4171_v31 = vpop.permute.xlu0 %1575  ;;  %1702 = vrot.lane.b32.xlu2 %v1671_v62, %s3188_s12  ;;  %1838 = vrot.lane.b32.xlu1 %v4069_v56, %s3186_s10  ;;  %v3173_v62 = vld [vmem:[#allocation2 + $0xf4] sm:$0xff]  ;;  %v2975_v56 = vrot.slane %v1394_v52, 11  ;;  %v1420_v52 = vsel %vm3312_vm4, %v1418_v43, %v1419_v33 }
 0x1e3   : > { %v4176_v47 = vpop.permute.xlu2 %1655  ;;  %v1726_v5 = vpop.permute.xlu1 %1725  ;;  %v1405_v48 = vsel %vm3437_vm7, %v2975_v56, %v1404_v63 }
 0x1e4   : > { %v1776_v46 = vunpack.c.l.b16 %v1405_v48 }
 0x1e7   : > { %1587 = vrot.lane.b32.xlu0 %v3173_v62, %s3183_s28 }
 0x1e9   : > { %v1689_v1 = vpop.permute.xlu0 %1688  ;;  %1873 = vrot.lane.b32.xlu2 %v4092_v61, %s3190_s14  ;;  %1667 = vrot.lane.b32.xlu1 %v3550_v24, %s3184_s29  ;;  %v1778_v61 = vpack.c.b16 %v1777_v0, %v1776_v46  ;;  %v1910_v24 = vsel %vm1883_vm9, %v3828_v17, %v4121_v8  ;;  %v1848_v8 = vunpack.c.l.b16 %v1420_v52 }
 0x1ea   : > { %v1950_v17 = vsel %vm1932_vm10, %v1910_v24, %v4123_v60 }
 0x1eb   : > { %v4195_v36 = vpop.permute.xlu2 %1727  ;;  %v1794_v55 = vpop.permute.xlu1 %1793  ;;  %v1983_v33 = vsel %vm1965_vm11, %v1950_v17, %v1689_v1 }
 0x1ec   : > { %v2079_v3 = vsel %vm2063_vm13, %v2046_v7, %v1794_v55  ;;  %v2015_v41 = vsel %vm360_vm0, %v1983_v33, %v1726_v5  ;;  %v1913_v55 = vsel %vm1883_vm9, %v3871_v22, %v4171_v31 }
 0x1ed   : > { %v2112_v50 = vsel %vm2096_vm14, %v2079_v3, %v4148_v2  ;;  %v1849_v2 = vunpack.c.l.b16 %v1428_v29  ;;  %v2048_v45 = vsel %vm2030_vm12, %v2015_v41, %v4165_v30 }
 0x1ef   : > { %1739 = vrot.lane.b32.xlu0 %v4125_v15, %s3185_s9  ;;  %v3135_v15 = vld [vmem:[#allocation2 + $0x114] sm:$0xff]  ;;  %v1850_v56 = vpack.c.b16 %v1849_v2, %v1848_v8 }
 0x1f0   : > { %v2249_v51 = vpop.f32.mrf.mxu1 }
 0x1f1   : > { %v1866_v39 = vpop.permute.xlu0 %1865  ;;  %1809 = vrot.lane.b32.xlu2 %v1778_v61, %s3189_s13  ;;  %1774 = vrot.lane.b32.xlu1 %v4135_v32, %s3187_s11  ;;  %v2327_v27 = vmul.f32 %v4119_v14, %v2249_v51  ;;  %v1952_v61 = vsel %vm1932_vm10, %v1913_v55, %v4176_v47  ;;  %s4345_s13 = scalar_lea.vmem %s4552_s5, %s3098_s24 }
 0x1f2   : > { %v2145_v13 = vsel %vm2129_vm15, %v2112_v50, %v1866_v39 }
 0x1f3   : > { %3071 = vmatmul.msk.bf16.gmra.mxu1 %vm2198_vm2, %v2145_v13  ;;  %v1868_v20 = vpop.permute.xlu2 %1867  ;;  %v1833_v18 = vpop.permute.xlu1 %1832  ;;  %v2360_v63 = vadd.f32 %v4133_v4, %v2327_v27 }
 0x1f5   : > { %v2392_v26 = vmax.f32 %v2360_v63, 0.0 }
 0x1f7   : > { %1846 = vrot.lane.b32.xlu0 %v3135_v15, %s3186_s10 }
 0x1f8   : > { %v2251_v62 = vpop.f32.mrf.mxu1 }
 0x1f9   : > { %v2328_v60 = vmul.f32 %v4119_v14, %v2251_v62  ;;  %v1796_v25 = vpop.permute.xlu0 %1795  ;;  %1881 = vrot.lane.b32.xlu1 %v1850_v56, %s3190_s14 }
 0x1fa   : > { %v2081_v9 = vsel %vm2063_vm13, %v2048_v45, %v1796_v25 }
 0x1fb   : > { %v2361_v32 = vadd.f32 %v4133_v4, %v2328_v60  ;;  %v1835_v21 = vpop.permute.xlu2 %1834  ;;  %v1578_v5 = vpop.permute.xlu1 %1577  ;;  %v2114_v48 = vsel %vm2096_vm14, %v2081_v9, %v1833_v18 }
 0x1fc   : > { %v2147_v46 = vsel %vm2129_vm15, %v2114_v48, %v1868_v20 }
 0x1fd   : > { %v2393_v1 = vmax.f32 %v2361_v32, 0.0 }
 0x1ff   : > { %v2423_v23 = vpack.c.bf16 %v2393_v1, %v2392_v26 }
 0x201   : > { %3081 = vmatmul.msk.bf16.gmra.mxu2 %vm1883_vm9, %v2423_v23  ;;  %v1763_v11 = vpop.permute.xlu0 %1762 }
 0x202   : > { %v2254_v38 = vpop.f32.mrf.mxu1 }
 0x203   : > { %3072 = vmatmul.msk.bf16.gmra.mxu1 %vm2198_vm2, %v2147_v46  ;;  %v1691_v30 = vpop.permute.xlu1 %1690  ;;  %v2329_v0 = vmul.f32 %v4119_v14, %v2254_v38  ;;  %v1693_v53 = vpop.permute.xlu2 %1692 }
 0x204   : > { %v1985_v39 = vsel %vm1965_vm11, %v1952_v61, %v1691_v30 }
 0x205   : > { %v2362_v16 = vadd.f32 %v4133_v4, %v2329_v0  ;;  %v2017_v15 = vsel %vm360_vm0, %v1985_v39, %v4195_v36  ;;  %v1916_v36 = vsel %vm1883_vm9, %v3918_v44, %v1578_v5 }
 0x206   : > { %v2050_v22 = vsel %vm2030_vm12, %v2017_v15, %v1763_v11 }
 0x207   : > { %v2394_v24 = vmax.f32 %v2362_v16, 0.0 }
 0x209   : > { %v1658_v43 = vpop.permute.xlu0 %1657 }
 0x20a   : > { %v2256_v28 = vpop.f32.mrf.mxu1  ;;  %v1954_v18 = vsel %vm1932_vm10, %v1916_v36, %v1658_v43 }
 0x20b   : > { %v2330_v7 = vmul.f32 %v4119_v14, %v2256_v28  ;;  %v1798_v51 = vpop.permute.xlu1 %1797  ;;  %v1800_v52 = vpop.permute.xlu2 %1799  ;;  %v1987_v56 = vsel %vm1965_vm11, %v1954_v18, %v1693_v53 }
 0x20c   : > { %v2083_v31 = vsel %vm2063_vm13, %v2050_v22, %v1798_v51 }
 0x20d   : > { %v2363_v3 = vadd.f32 %v4133_v4, %v2330_v7  ;;  %v2116_v47 = vsel %vm2096_vm14, %v2083_v31, %v1835_v21 }
 0x20f   : > { %v2395_v50 = vmax.f32 %v2363_v3, 0.0 }
 0x211   : > { %v1730_v29 = vpop.permute.xlu0 %1729  ;;  %v2424_v13 = vpack.c.bf16 %v2395_v50, %v2394_v24 }
 0x212   : > { %v2019_v60 = vsel %vm360_vm0, %v1987_v56, %v1730_v29 }
 0x213   : > { %3082 = vmatmul.msk.bf16.gmra.mxu2 %vm1883_vm9, %v2424_v13  ;;  %v1765_v17 = vpop.permute.xlu1 %1764  ;;  %v1697_v33 = vpop.permute.xlu2 %1696 }
 0x214   : > { %v2052_v9 = vsel %vm2030_vm12, %v2019_v60, %v1765_v17 }
 0x215   : > { %v2085_v23 = vsel %vm2063_vm13, %v2052_v9, %v1800_v52 }
 0x219   : > { %v1870_v8 = vpop.permute.xlu0 %1869 }
 0x21a   : > { %v2149_v2 = vsel %vm2129_vm15, %v2116_v47, %v1870_v8  ;;  %v2259_v27 = vpop.f32.mrf.mxu1 }
 0x21b   : > { %3073 = vmatmul.msk.bf16.gmra.mxu1 %vm2198_vm2, %v2149_v2  ;;  %v1662_v20 = vpop.permute.xlu1 %1661  ;;  %v2331_v41 = vmul.f32 %v4119_v14, %v2259_v27  ;;  %v1580_v32 = vpop.permute.xlu2 %1579 }
 0x21d   : > { %v2364_v25 = vadd.f32 %v4133_v4, %v2331_v41 }
 0x21f   : > { %v2396_v1 = vmax.f32 %v2364_v25, 0.0  ;;  %v1919_v25 = vsel %vm1883_vm9, %v3972_v34, %v1580_v32 }
 0x221   : > { %v1582_v62 = vpop.permute.xlu0 %1581 }
 0x222   : > { %v2261_v63 = vpop.f32.mrf.mxu1  ;;  %v1922_v30 = vsel %vm1883_vm9, %v4042_v54, %v1582_v62 }
 0x223   : > { %v2332_v45 = vmul.f32 %v4119_v14, %v2261_v63  ;;  %v1872_v26 = vpop.permute.xlu1 %1871  ;;  %v1664_v0 = vpop.permute.xlu2 %1663  ;;  %v1958_v28 = vsel %vm1932_vm10, %v1922_v30, %v1662_v20 }
 0x224   : > { %v1991_v55 = vsel %vm1965_vm11, %v1958_v28, %v1697_v33  ;;  %v226_v28 = vld [vmem:[%s3243_s27] sm:$0xff]  }
 0x225   : > { %v2365_v44 = vadd.f32 %v4133_v4, %v2332_v45 }
 0x227   : > { %v2397_v21 = vmax.f32 %v2365_v44, 0.0 }
 0x229   : > { %v1837_v5 = vpop.permute.xlu0 %1836  ;;  %v2425_v38 = vpack.c.bf16 %v2397_v21, %v2396_v1 }
 0x22a   : > { %v2118_v48 = vsel %vm2096_vm14, %v2085_v23, %v1837_v5 }
 0x22b   : > { %v2151_v11 = vsel %vm2129_vm15, %v2118_v48, %v1872_v26  ;;  %3083 = vmatmul.msk.bf16.gmra.mxu2 %vm1883_vm9, %v2425_v38  ;;  %v1584_v46 = vpop.permute.xlu1 %1583  ;;  %v1880_v50 = vpop.permute.xlu2 %1879 }
 0x22c   : > { %3074 = vmatmul.msk.bf16.gmra.mxu1 %vm2198_vm2, %v2151_v11  ;;  %v1925_v16 = vsel %vm1883_vm9, %v4065_v49, %v1584_v46 }
 0x22d   : > { %v1960_v24 = vsel %vm1932_vm10, %v1925_v16, %v1664_v0  ;;  %v4329_v16 = vld [vmem:[%s4551_s4 + $0x5] ss:$0 sm:$0xff] }
 0x22e   : > { %v1993_v22 = vsel %vm1965_vm11, %v1960_v24, %v3703_v37 }
 0x22f   : > { %v2025_v8 = vsel %vm360_vm0, %v1993_v22, %v3685_v40 }
 0x230   : > { %v2264_v53 = vpop.f32.mrf.mxu1 }
 0x231   : > { %v1734_v43 = vpop.permute.xlu0 %1733  ;;  %v2333_v7 = vmul.f32 %v4119_v14, %v2264_v53  ;;  %v4323_v53 = vld [vmem:[%s4551_s4 + $0x4] ss:$0 sm:$0xff] }
 0x232   : > { %v2023_v3 = vsel %vm360_vm0, %v1991_v55, %v1734_v43 }
 0x233   : > { %v1769_v61 = vpop.permute.xlu1 %1768  ;;  %v2366_v52 = vadd.f32 %v4133_v4, %v2333_v7  ;;  %v1767_v27 = vpop.permute.xlu2 %1766 }
 0x234   : > { %v2056_v51 = vsel %vm2030_vm12, %v2023_v3, %v1769_v61  ;;  %v2645_v61 = vunpack.c.l.bf16 %v226_v28 }
 0x235   : > { %v2089_v54 = vsel %vm2063_vm13, %v2056_v51, %v3624_v35  ;;  %v2398_v35 = vmax.f32 %v2366_v52, 0.0 }
 0x236   : > { %v2122_v13 = vsel %vm2096_vm14, %v2089_v54, %v3647_v59 }
 0x237   : > { %v2155_v15 = vsel %vm2129_vm15, %v2122_v13, %v3743_v19  ;;  %v2058_v19 = vsel %vm2030_vm12, %v2025_v8, %v3687_v6 }
 0x238   : > { %v2266_v39 = vpop.f32.mrf.mxu1  ;;  %3076 = vmatmul.msk.bf16.vlgmr.msrb.gmra.mxu3 %vm2198_vm2, %v2155_v15  ;;  %v2091_v37 = vsel %vm2063_vm13, %v2058_v19, %v3806_v42 }
 0x239   : > { %v2334_v49 = vmul.f32 %v4119_v14, %v2266_v39  ;;  %v1773_v29 = vpop.permute.xlu0 %1772  ;;  %v2124_v18 = vsel %vm2096_vm14, %v2091_v37, %v3714_v10 }
 0x23a   : > { %v2157_v62 = vsel %vm2129_vm15, %v2124_v18, %v3835_v12  ;;  %v2060_v21 = vsel %vm2030_vm12, %v3804_v58, %v1773_v29 }
 0x23b   : > { %v2367_v31 = vadd.f32 %v4133_v4, %v2334_v49  ;;  %v1808_v47 = vpop.permute.xlu1 %1807  ;;  %v1703_v63 = vpop.permute.xlu2 %1702 }
 0x23c   : > { %v2093_v34 = vsel %vm2063_vm13, %v2060_v21, %v1808_v47 }
 0x23d   : > { %v2399_v17 = vmax.f32 %v2367_v31, 0.0 }
 0x23f   : > { %v2426_v2 = vpack.c.bf16 %v2399_v17, %v2398_v35  ;;  %v2646_v17 = vunpack.c.h.bf16 %v226_v28 }
 0x241   : > { %3084 = vmatmul.msk.bf16.gmra.mxu2 %vm1883_vm9, %v2426_v2  ;;  %v1845_v59 = vpop.permute.xlu0 %1844 }
 0x242   : > { %v2269_v33 = vpop.f32.mrf.mxu1  ;;  %v2126_v48 = vsel %vm2096_vm14, %v2093_v34, %v1845_v59 }
 0x243   : > { %v1660_v20 = vpop.permute.xlu1 %1659  ;;  %v2335_v36 = vmul.f32 %v4119_v14, %v2269_v33  ;;  %v1874_v11 = vpop.permute.xlu2 %1873  ;;  %v2159_v58 = vsel %vm2129_vm15, %v2126_v48, %v1880_v50 }
 0x244   : > { %v1956_v9 = vsel %vm1932_vm10, %v1919_v25, %v1660_v20 }
 0x245   : > { %v2368_v56 = vadd.f32 %v4133_v4, %v2335_v36 }
 0x247   : > { %v2400_v45 = vmax.f32 %v2368_v56, 0.0 }
 0x248   : > { %3077 = vmatmul.msk.bf16.gmra.mxu3 %vm2198_vm2, %v2157_v62 }
 0x249   : > { %v1695_v40 = vpop.permute.xlu0 %1694 }
 0x24a   : > { %v2271_v41 = vpop.f32.mrf.mxu1  ;;  %v1989_v26 = vsel %vm1965_vm11, %v1956_v9, %v1695_v40 }
 0x24b   : > { %v2336_v6 = vmul.f32 %v4119_v14, %v2271_v41  ;;  %v1732_v60 = vpop.permute.xlu1 %1731  ;;  %v1810_v33 = vpop.permute.xlu2 %1809 }
 0x24c   : > { %v2021_v1 = vsel %vm360_vm0, %v1989_v26, %v1732_v60 }
 0x24d   : > { %v2369_v42 = vadd.f32 %v4133_v4, %v2336_v6  ;;  %v2054_v5 = vsel %vm2030_vm12, %v2021_v1, %v1767_v27  ;;  %v228_v1 = vld [vmem:[%s3243_s27 + $0x8] sm:$0xff]  }
 0x24f   : > { %v2401_v10 = vmax.f32 %v2369_v42, 0.0 }
 0x251   : > { %v1802_v12 = vpop.permute.xlu0 %1801  ;;  %v2427_v44 = vpack.c.bf16 %v2401_v10, %v2400_v45 }
 0x252   : > { %v2087_v32 = vsel %vm2063_vm13, %v2054_v5, %v1802_v12 }
 0x253   : > { %3085 = vmatmul.msk.bf16.gmra.mxu2 %vm1883_vm9, %v2427_v44  ;;  %v1839_v23 = vpop.permute.xlu1 %1838 }
 0x254   : > { %v2120_v38 = vsel %vm2096_vm14, %v2087_v32, %v1839_v23  ;;  %v2647_v32 = vunpack.c.l.bf16 %v228_v1 }
 0x255   : > { %v2153_v46 = vsel %vm2129_vm15, %v2120_v38, %v1874_v11 }
 0x256   : > { %3075 = vmatmul.msk.bf16.gmra.mxu1 %vm2198_vm2, %v2153_v46 }
 0x258   : > { %3078 = vmatmul.msk.bf16.gmra.mxu3 %vm2198_vm2, %v2159_v58 }
 0x259   : > { %v1588_v30 = vpop.permute.xlu0 %1587 }
 0x25a   : > { %v2274_v0 = vpop.f32.mrf.mxu1  ;;  %v1931_v54 = vsel %vm1883_vm9, %v3526_v57, %v1588_v30 }
 0x25b   : > { %v1668_v43 = vpop.permute.xlu1 %1667  ;;  %v2337_v7 = vmul.f32 %v4119_v14, %v2274_v0 }
 0x25c   : > { %v1964_v52 = vsel %vm1932_vm10, %v1931_v54, %v1668_v43  ;;  %v2648_v43 = vunpack.c.h.bf16 %v228_v1 }
 0x25d   : > { %v2370_v39 = vadd.f32 %v4133_v4, %v2337_v7  ;;  %v1997_v57 = vsel %vm1965_vm11, %v1964_v52, %v1703_v63 }
 0x25e   : > { %v2499_v55 = vpop.f32.mrf.mxu2 }
 0x25f   : > { %v2580_v3 = vmul.f32 %v4323_v53, %v2499_v55  ;;  %v2402_v31 = vmax.f32 %v2370_v39, 0.0  ;;  %v230_v39 = vld [vmem:[%s3243_s27 + $0x10] sm:$0xff]  }
 0x261   : > { %v1740_v51 = vpop.permute.xlu0 %1739  ;;  %v2613_v24 = vadd.f32 %v4329_v16, %v2580_v3 }
 0x262   : > { %v2276_v50 = vpop.f32.mrf.mxu1  ;;  %v2029_v47 = vsel %vm360_vm0, %v1997_v57, %v1740_v51 }
 0x263   : > { %v2677_v49 = vadd.f32 %v2645_v61, %v2613_v24  ;;  %v2338_v29 = vmul.f32 %v4119_v14, %v2276_v50  ;;  %v1775_v13 = vpop.permute.xlu1 %1774 }
 0x264   : > { %v2062_v19 = vsel %vm2030_vm12, %v2029_v47, %v1775_v13  ;;  %v2650_v47 = vunpack.c.h.bf16 %v230_v39 }
 0x265   : > { %v2709_v15 = vmax.f32 %v2677_v49, 0.0  ;;  %v2371_v22 = vadd.f32 %v4133_v4, %v2338_v29  ;;  %v2095_v36 = vsel %vm2063_vm13, %v2062_v19, %v1810_v33  ;;  %v2649_v29 = vunpack.c.l.bf16 %v230_v39 }
 0x266   : > { %v2501_v35 = vpop.f32.mrf.mxu2 }
 0x267   : > { %v2741_v8 = vpack.c.bf16 %v2709_v15, %v2709_v15  ;;  %v2403_v2 = vmax.f32 %v2371_v22, 0.0  ;;  %v2581_v59 = vmul.f32 %v4323_v53, %v2501_v35 }
 0x269   : > { %2774 = vst.msk [vmem:[%s4345_s13] sm:$0xf] %vm2773_vm1, %v2741_v8  ;;  %v2614_v27 = vadd.f32 %v4329_v16, %v2581_v59  ;;  %v1847_v37 = vpop.permute.xlu0 %1846  ;;  %v2428_v20 = vpack.c.bf16 %v2403_v2, %v2402_v31 }
 0x26a   : > { %v2128_v40 = vsel %vm2096_vm14, %v2095_v36, %v1847_v37 }
 0x26b   : > { %v2678_v18 = vadd.f32 %v2646_v17, %v2614_v27  ;;  %3086 = vmatmul.msk.bf16.gmra.mxu2 %vm1883_vm9, %v2428_v20  ;;  %v1882_v41 = vpop.permute.xlu1 %1881 }
 0x26c   : > { %v2161_v56 = vsel %vm2129_vm15, %v2128_v40, %v1882_v41 }
 0x26d   : > { %v2710_v62 = vmax.f32 %v2678_v18, 0.0  ;;  %3079 = vmatmul.msk.bf16.gmra.mxu3 %vm2198_vm2, %v2161_v56 }
 0x26f   : > { %v2742_v63 = vpack.c.bf16 %v2710_v62, %v2710_v62 }
 0x270   : > { %v2279_v6 = vpop.f32.mrf.mxu1 }
 0x271   : > { %2775 = vst.msk [vmem:[%s4345_s13 + $0x4] sm:$0xf] %vm2773_vm1, %v2742_v63  ;;  %v2339_v42 = vmul.f32 %v4119_v14, %v2279_v6  ;;  %v232_v6 = vld [vmem:[%s3243_s27 + $0x18] sm:$0xff]  }
 0x273   : > { %v2372_v25 = vadd.f32 %v4133_v4, %v2339_v42 }
 0x275   : > { %v2404_v9 = vmax.f32 %v2372_v25, 0.0  ;;  %v2651_v25 = vunpack.c.l.bf16 %v232_v6 }
 0x278   : > { %v2281_v60 = vpop.f32.mrf.mxu1 }
 0x279   : > { %v2340_v45 = vmul.f32 %v4119_v14, %v2281_v60 }
 0x27b   : > { %v2373_v10 = vadd.f32 %v4133_v4, %v2340_v45 }
 0x27d   : > { %v2405_v26 = vmax.f32 %v2373_v10, 0.0 }
 0x27f   : > { %v2429_v12 = vpack.c.bf16 %v2405_v26, %v2404_v9 }
 0x280   : > { %v2284_v44 = vpop.f32.mrf.mxu1 }
 0x281   : > { %3087 = vmatmul.msk.bf16.gmra.mxu2 %vm1883_vm9, %v2429_v12  ;;  %v2341_v5 = vmul.f32 %v4119_v14, %v2284_v44 }
 0x283   : > { %v2374_v11 = vadd.f32 %v4133_v4, %v2341_v5 }
 0x284   : > { %v2504_v21 = vpop.f32.mrf.mxu2 }
 0x285   : > { %v2582_v34 = vmul.f32 %v4323_v53, %v2504_v21  ;;  %v2406_v28 = vmax.f32 %v2374_v11, 0.0 }
 0x287   : > { %v2615_v23 = vadd.f32 %v4329_v16, %v2582_v34 }
 0x288   : > { %v2286_v48 = vpop.f32.mrf.mxu1 }
 0x289   : > { %v2679_v38 = vadd.f32 %v2647_v32, %v2615_v23  ;;  %v2342_v46 = vmul.f32 %v4119_v14, %v2286_v48  ;;  %v2652_v48 = vunpack.c.h.bf16 %v232_v6 }
 0x28b   : > { %v2711_v30 = vmax.f32 %v2679_v38, 0.0  ;;  %v2375_v58 = vadd.f32 %v4133_v4, %v2342_v46 }
 0x28c   : > { %v2506_v0 = vpop.f32.mrf.mxu2 }
 0x28d   : > { %v2743_v7 = vpack.c.bf16 %v2711_v30, %v2711_v30  ;;  %v2407_v55 = vmax.f32 %v2375_v58, 0.0  ;;  %v2583_v3 = vmul.f32 %v4323_v53, %v2506_v0  ;;  %v234_v0 = vld [vmem:[%s3243_s27 + $0x20] sm:$0xff]  }
 0x28f   : > { %2776 = vst.msk [vmem:[%s4345_s13 + $0x8] sm:$0xf] %vm2773_vm1, %v2743_v7  ;;  %v2616_v61 = vadd.f32 %v4329_v16, %v2583_v3  ;;  %v2430_v51 = vpack.c.bf16 %v2407_v55, %v2406_v28  ;;  %v2653_v7 = vunpack.c.l.bf16 %v234_v0 }
 0x291   : > { %v2680_v24 = vadd.f32 %v2648_v43, %v2616_v61  ;;  %3088 = vmatmul.msk.bf16.gmra.mxu2 %vm1883_vm9, %v2430_v51 }
 0x293   : > { %v2712_v54 = vmax.f32 %v2680_v24, 0.0 }
 0x295   : > { %v2744_v50 = vpack.c.bf16 %v2712_v54, %v2712_v54 }
 0x296   : > { %v2509_v52 = vpop.f32.mrf.mxu2 }
 0x297   : > { %2777 = vst.msk [vmem:[%s4345_s13 + $0xc] sm:$0xf] %vm2773_vm1, %v2744_v50  ;;  %v2584_v49 = vmul.f32 %v4323_v53, %v2509_v52  ;;  %v2654_v50 = vunpack.c.h.bf16 %v234_v0 }
 0x298   : > { %v2289_v13 = vpop.f32.mrf.mxu1 }
 0x299   : > { %v2617_v15 = vadd.f32 %v4329_v16, %v2584_v49  ;;  %v2343_v57 = vmul.f32 %v4119_v14, %v2289_v13 }
 0x29b   : > { %v2681_v22 = vadd.f32 %v2649_v29, %v2617_v15  ;;  %v2376_v59 = vadd.f32 %v4133_v4, %v2343_v57 }
 0x29d   : > { %v2713_v31 = vmax.f32 %v2681_v22, 0.0  ;;  %v2408_v20 = vmax.f32 %v2376_v59, 0.0 }
 0x29e   : > { %v2511_v35 = vpop.f32.mrf.mxu2 }
 0x29f   : > { %v2745_v17 = vpack.c.bf16 %v2713_v31, %v2713_v31  ;;  %v2585_v8 = vmul.f32 %v4323_v53, %v2511_v35  ;;  %v236_v31 = vld [vmem:[%s3243_s27 + $0x28] sm:$0xff]  }
 0x2a0   : > { %v2291_v2 = vpop.f32.mrf.mxu1  ;;  %v2655_v59 = vunpack.c.l.bf16 %v236_v31 }
 0x2a1   : > { %2778 = vst.msk [vmem:[%s4345_s13 + $0x10] sm:$0xf] %vm2773_vm1, %v2745_v17  ;;  %v2618_v19 = vadd.f32 %v4329_v16, %v2585_v8  ;;  %v2344_v33 = vmul.f32 %v4119_v14, %v2291_v2 }
 0x2a3   : > { %v2682_v27 = vadd.f32 %v2650_v47, %v2618_v19  ;;  %v2377_v37 = vadd.f32 %v4133_v4, %v2344_v33 }
 0x2a5   : > { %v2714_v36 = vmax.f32 %v2682_v27, 0.0  ;;  %v2409_v18 = vmax.f32 %v2377_v37, 0.0 }
 0x2a7   : > { %v2746_v40 = vpack.c.bf16 %v2714_v36, %v2714_v36  ;;  %v2431_v41 = vpack.c.bf16 %v2409_v18, %v2408_v20 }
 0x2a9   : > { %2779 = vst.msk [vmem:[%s4345_s13 + $0x14] sm:$0xf] %vm2773_vm1, %v2746_v40  ;;  %v2294_v62 = vpop.f32.mrf.mxu1  ;;  %3089 = vmatmul.msk.bf16.gmra.mxu2 %vm1883_vm9, %v2431_v41 }
 0x2aa   : > { %v2345_v56 = vmul.f32 %v4119_v14, %v2294_v62 }
 0x2ac   : > { %v2378_v45 = vadd.f32 %v4133_v4, %v2345_v56 }
 0x2ae   : > { %v2514_v63 = vpop.f32.mrf.mxu2  ;;  %v2410_v44 = vmax.f32 %v2378_v45, 0.0 }
 0x2af   : > { %v2586_v60 = vmul.f32 %v4323_v53, %v2514_v63 }
 0x2b1   : > { %v2296_v42 = vpop.f32.mrf.mxu1  ;;  %v2619_v9 = vadd.f32 %v4329_v16, %v2586_v60 }
 0x2b2   : > { %v2346_v10 = vmul.f32 %v4119_v14, %v2296_v42 }
 0x2b3   : > { %v2683_v12 = vadd.f32 %v2651_v25, %v2619_v9  ;;  %v2656_v25 = vunpack.c.h.bf16 %v236_v31 }
 0x2b4   : > { %v2379_v26 = vadd.f32 %v4133_v4, %v2346_v10 }
 0x2b5   : > { %v2715_v21 = vmax.f32 %v2683_v12, 0.0 }
 0x2b6   : > { %v2411_v1 = vmax.f32 %v2379_v26, 0.0  ;;  %v2516_v5 = vpop.f32.mrf.mxu2 }
 0x2b7   : > { %v2747_v32 = vpack.c.bf16 %v2715_v21, %v2715_v21  ;;  %v2587_v23 = vmul.f32 %v4323_v53, %v2516_v5 }
 0x2b8   : > { %v2432_v34 = vpack.c.bf16 %v2411_v1, %v2410_v44 }
 0x2b9   : > { %2780 = vst.msk [vmem:[%s4345_s13 + $0x18] sm:$0xf] %vm2773_vm1, %v2747_v32  ;;  %v2620_v11 = vadd.f32 %v4329_v16, %v2587_v23 }
 0x2ba   : > { %3090 = vmatmul.msk.bf16.gmra.mxu2 %vm1883_vm9, %v2432_v34 }
 0x2bb   : > { %v2684_v38 = vadd.f32 %v2652_v48, %v2620_v11  ;;  %v4406_v46 = vpop.f32.mrf.mxu3 }
 0x2bd   : > { %v2716_v30 = vmax.f32 %v2684_v38, 0.0  ;;  %v2349_v38 = vmul.f32 %v4119_v14, %v4406_v46 }
 0x2bf   : > { %v2748_v58 = vpack.c.bf16 %v2716_v30, %v2716_v30 }
 0x2c1   : > { %2781 = vst.msk [vmem:[%s4345_s13 + $0x1c] sm:$0xf] %vm2773_vm1, %v2748_v58 }
 0x2c3   : > { %v2306_v55 = vpop.f32.mrf.mxu3 }
 0x2c4   : > { %v2519_v43 = vpop.f32.mrf.mxu2  ;;  %v2350_v48 = vmul.f32 %v4119_v14, %v2306_v55 }
 0x2c5   : > { %v2588_v28 = vmul.f32 %v4323_v53, %v2519_v43 }
 0x2c6   : > { %v2383_v0 = vadd.f32 %v4133_v4, %v2350_v48 }
 0x2c7   : > { %v2621_v3 = vadd.f32 %v4329_v16, %v2588_v28  ;;  %v238_v28 = vld [vmem:[%s3243_s27 + $0x30] sm:$0xff]  }
 0x2c8   : > { %v2415_v55 = vmax.f32 %v2383_v0, 0.0 }
 0x2c9   : > { %v2685_v61 = vadd.f32 %v2653_v7, %v2621_v3  ;;  %v2382_v7 = vadd.f32 %v4133_v4, %v2349_v38 }
 0x2cb   : > { %v2717_v51 = vmax.f32 %v2685_v61, 0.0  ;;  %v2309_v52 = vpop.f32.mrf.mxu3 }
 0x2cc   : > { %v2521_v24 = vpop.f32.mrf.mxu2  ;;  %v2351_v15 = vmul.f32 %v4119_v14, %v2309_v52 }
 0x2cd   : > { %v2749_v54 = vpack.c.bf16 %v2717_v51, %v2717_v51  ;;  %v2589_v39 = vmul.f32 %v4323_v53, %v2521_v24  ;;  %v2657_v51 = vunpack.c.l.bf16 %v238_v28  ;;  %v2414_v24 = vmax.f32 %v2382_v7, 0.0 }
 0x2ce   : > { %v2384_v17 = vadd.f32 %v4133_v4, %v2351_v15 }
 0x2cf   : > { %2782 = vst.msk [vmem:[%s4345_s13 + $0x20] sm:$0xf] %vm2773_vm1, %v2749_v54  ;;  %v2622_v49 = vadd.f32 %v4329_v16, %v2589_v39  ;;  %v2434_v39 = vpack.c.bf16 %v2415_v55, %v2414_v24 }
 0x2d0   : > { %v2416_v27 = vmax.f32 %v2384_v17, 0.0 }
 0x2d1   : > { %v2686_v29 = vadd.f32 %v2654_v50, %v2622_v49 }
 0x2d3   : > { %v2718_v13 = vmax.f32 %v2686_v29, 0.0  ;;  %v2299_v57 = vpop.f32.mrf.mxu1  ;;  %v2311_v35 = vpop.f32.mrf.mxu3 }
 0x2d4   : > { %v2352_v8 = vmul.f32 %v4119_v14, %v2311_v35  ;;  %v2347_v37 = vmul.f32 %v4119_v14, %v2299_v57 }
 0x2d5   : > { %v2750_v22 = vpack.c.bf16 %v2718_v13, %v2718_v13 }
 0x2d6   : > { %v2524_v47 = vpop.f32.mrf.mxu2  ;;  %v2385_v19 = vadd.f32 %v4133_v4, %v2352_v8  ;;  %v2380_v56 = vadd.f32 %v4133_v4, %v2347_v37 }
 0x2d7   : > { %2783 = vst.msk [vmem:[%s4345_s13 + $0x24] sm:$0xf] %vm2773_vm1, %v2750_v22  ;;  %v2590_v2 = vmul.f32 %v4323_v53, %v2524_v47  ;;  %v2658_v22 = vunpack.c.h.bf16 %v238_v28 }
 0x2d8   : > { %v2417_v20 = vmax.f32 %v2385_v19, 0.0  ;;  %v2412_v9 = vmax.f32 %v2380_v56, 0.0 }
 0x2d9   : > { %v2623_v33 = vadd.f32 %v4329_v16, %v2590_v2 }
 0x2da   : > { %v2435_v18 = vpack.c.bf16 %v2417_v20, %v2416_v27  ;;  %v240_v27 = vld [vmem:[%s3243_s27 + $0x38] sm:$0xff]  }
 0x2db   : > { %v2687_v36 = vadd.f32 %v2655_v59, %v2623_v33  ;;  %v2301_v41 = vpop.f32.mrf.mxu1  ;;  %v2314_v62 = vpop.f32.mrf.mxu3 }
 0x2dc   : > { %v2348_v6 = vmul.f32 %v4119_v14, %v2301_v41  ;;  %3093 = vmatmul.msk.bf16.vlgmr.msra.gmra.mxu3 %vm1883_vm9, %v2435_v18  ;;  %v2353_v12 = vmul.f32 %v4119_v14, %v2314_v62  ;;  %v2659_v18 = vunpack.c.l.bf16 %v240_v27 }
 0x2dd   : > { %v2719_v40 = vmax.f32 %v2687_v36, 0.0 }
 0x2de   : > { %v2526_v63 = vpop.f32.mrf.mxu2  ;;  %v2381_v45 = vadd.f32 %v4133_v4, %v2348_v6  ;;  %v2386_v34 = vadd.f32 %v4133_v4, %v2353_v12  ;;  %v2660_v6 = vunpack.c.h.bf16 %v240_v27 }
 0x2df   : > { %v2751_v42 = vpack.c.bf16 %v2719_v40, %v2719_v40  ;;  %v2591_v60 = vmul.f32 %v4323_v53, %v2526_v63 }
 0x2e0   : > { %v2413_v26 = vmax.f32 %v2381_v45, 0.0  ;;  %v2418_v30 = vmax.f32 %v2386_v34, 0.0 }
 0x2e1   : > { %2784 = vst.msk [vmem:[%s4345_s13 + $0x28] sm:$0xf] %vm2773_vm1, %v2751_v42  ;;  %v2624_v10 = vadd.f32 %v4329_v16, %v2591_v60  ;;  %v242_v60 = vld [vmem:[%s3243_s27 + $0x40] sm:$0xff]  }
 0x2e2   : > { %v2433_v1 = vpack.c.bf16 %v2413_v26, %v2412_v9  ;;  %v2661_v26 = vunpack.c.l.bf16 %v242_v60 }
 0x2e3   : > { %v2688_v44 = vadd.f32 %v2656_v25, %v2624_v10  ;;  %v2316_v5 = vpop.f32.mrf.mxu3 }
 0x2e4   : > { %v2354_v32 = vmul.f32 %v4119_v14, %v2316_v5  ;;  %3091 = vmatmul.msk.bf16.gmra.mxu2 %vm1883_vm9, %v2433_v1 }
 0x2e5   : > { %v2720_v21 = vmax.f32 %v2688_v44, 0.0 }
 0x2e6   : > { %v2387_v11 = vadd.f32 %v4133_v4, %v2354_v32  ;;  %v2662_v32 = vunpack.c.h.bf16 %v242_v60 }
 0x2e7   : > { %v2752_v23 = vpack.c.bf16 %v2720_v21, %v2720_v21 }
 0x2e8   : > { %v2419_v58 = vmax.f32 %v2387_v11, 0.0 }
 0x2e9   : > { %2785 = vst.msk [vmem:[%s4345_s13 + $0x2c] sm:$0xf] %vm2773_vm1, %v2752_v23 }
 0x2ea   : > { %v2436_v43 = vpack.c.bf16 %v2419_v58, %v2418_v30  ;;  %v244_v30 = vld [vmem:[%s3243_s27 + $0x48] sm:$0xff]  }
 0x2eb   : > { %v2664_v24 = vunpack.c.h.bf16 %v244_v30 }
 0x2ec   : > { %3094 = vmatmul.msk.bf16.gmra.mxu3 %vm1883_vm9, %v2436_v43  ;;  %v2663_v43 = vunpack.c.l.bf16 %v244_v30 }
 0x2ee   : > { %v2529_v3 = vpop.f32.mrf.mxu2 }
 0x2ef   : > { %v2592_v61 = vmul.f32 %v4323_v53, %v2529_v3 }
 0x2f0   : > { %v2319_v46 = vpop.f32.mrf.mxu3 }
 0x2f1   : > { %v2625_v54 = vadd.f32 %v4329_v16, %v2592_v61  ;;  %v2355_v49 = vmul.f32 %v4119_v14, %v2319_v46 }
 0x2f3   : > { %v2689_v50 = vadd.f32 %v2657_v51, %v2625_v54  ;;  %v2388_v35 = vadd.f32 %v4133_v4, %v2355_v49 }
 0x2f4   : > { %3092 = vmatmul.msk.bf16.gmra.mxu2 %vm1883_vm9, %v2434_v39 }
 0x2f5   : > { %v2721_v52 = vmax.f32 %v2689_v50, 0.0  ;;  %v2420_v59 = vmax.f32 %v2388_v35, 0.0  ;;  %v246_v50 = vld [vmem:[%s3243_s27 + $0x50] sm:$0xff]  }
 0x2f6   : > { %v2531_v29 = vpop.f32.mrf.mxu2 }
 0x2f7   : > { %v2753_v13 = vpack.c.bf16 %v2721_v52, %v2721_v52  ;;  %v2593_v15 = vmul.f32 %v4323_v53, %v2531_v29 }
 0x2f8   : > { %v2321_v57 = vpop.f32.mrf.mxu3 }
 0x2f9   : > { %2786 = vst.msk [vmem:[%s4345_s13 + $0x30] sm:$0xf] %vm2773_vm1, %v2753_v13  ;;  %v2626_v31 = vadd.f32 %v4329_v16, %v2593_v15  ;;  %v2356_v17 = vmul.f32 %v4119_v14, %v2321_v57  ;;  %v2665_v13 = vunpack.c.l.bf16 %v246_v50 }
 0x2fb   : > { %v2690_v8 = vadd.f32 %v2658_v22, %v2626_v31  ;;  %v2389_v47 = vadd.f32 %v4133_v4, %v2356_v17 }
 0x2fd   : > { %v2722_v2 = vmax.f32 %v2690_v8, 0.0  ;;  %v2421_v19 = vmax.f32 %v2389_v47, 0.0  ;;  %v2666_v8 = vunpack.c.h.bf16 %v246_v50 }
 0x2ff   : > { %v2754_v33 = vpack.c.bf16 %v2722_v2, %v2722_v2  ;;  %v2437_v37 = vpack.c.bf16 %v2421_v19, %v2420_v59 }
 0x301   : > { %2787 = vst.msk [vmem:[%s4345_s13 + $0x34] sm:$0xf] %vm2773_vm1, %v2754_v33  ;;  %3095 = vmatmul.msk.bf16.gmra.mxu3 %vm1883_vm9, %v2437_v37  ;;  %v252_v33 = vld [vmem:[%s3243_s27 + $0x68] sm:$0xff]  }
 0x304   : > { %v2534_v20 = vpop.f32.mrf.mxu2 }
 0x305   : > { %v2594_v36 = vmul.f32 %v4323_v53, %v2534_v20  ;;  %v2671_v20 = vunpack.c.l.bf16 %v252_v33 }
 0x307   : > { %v2627_v14 = vadd.f32 %v4329_v16, %v2594_v36 }
 0x309   : > { %v2691_v4 = vadd.f32 %v2659_v18, %v2627_v14  ;;  %v248_v14 = vld [vmem:[%s3243_s27 + $0x58] sm:$0xff]  }
 0x30b   : > { %v2723_v40 = vmax.f32 %v2691_v4, 0.0 }
 0x30c   : > { %v2536_v41 = vpop.f32.mrf.mxu2 }
 0x30d   : > { %v2755_v62 = vpack.c.bf16 %v2723_v40, %v2723_v40  ;;  %v2595_v56 = vmul.f32 %v4323_v53, %v2536_v41  ;;  %v2667_v41 = vunpack.c.l.bf16 %v248_v14 }
 0x30f   : > { %2788 = vst.msk [vmem:[%s4345_s13 + $0x38] sm:$0xf] %vm2773_vm1, %v2755_v62  ;;  %v2628_v63 = vadd.f32 %v4329_v16, %v2595_v56 }
 0x311   : > { %v2692_v42 = vadd.f32 %v2660_v6, %v2628_v63 }
 0x313   : > { %v2724_v25 = vmax.f32 %v2692_v42, 0.0  ;;  %v2672_v42 = vunpack.c.h.bf16 %v252_v33 }
 0x314   : > { %v2539_v45 = vpop.f32.mrf.mxu2 }
 0x315   : > { %v2756_v10 = vpack.c.bf16 %v2724_v25, %v2724_v25  ;;  %v2596_v9 = vmul.f32 %v4323_v53, %v2539_v45 }
 0x317   : > { %2789 = vst.msk [vmem:[%s4345_s13 + $0x3c] sm:$0xf] %vm2773_vm1, %v2756_v10  ;;  %v2629_v12 = vadd.f32 %v4329_v16, %v2596_v9  ;;  %v254_v9 = vld [vmem:[%s3243_s27 + $0x70] sm:$0xff]  }
 0x319   : > { %v2693_v44 = vadd.f32 %v2661_v26, %v2629_v12 }
 0x31b   : > { %v2725_v1 = vmax.f32 %v2693_v44, 0.0 }
 0x31c   : > { %v2541_v21 = vpop.f32.mrf.mxu2 }
 0x31d   : > { %v2757_v5 = vpack.c.bf16 %v2725_v1, %v2725_v1  ;;  %v2597_v34 = vmul.f32 %v4323_v53, %v2541_v21  ;;  %v2668_v1 = vunpack.c.h.bf16 %v248_v14 }
 0x31f   : > { %2790 = vst.msk [vmem:[%s4345_s13 + $0x40] sm:$0xf] %vm2773_vm1, %v2757_v5  ;;  %v2630_v23 = vadd.f32 %v4329_v16, %v2597_v34  ;;  %v2673_v5 = vunpack.c.l.bf16 %v254_v9 }
 0x321   : > { %v2694_v48 = vadd.f32 %v2662_v32, %v2630_v23 }
 0x323   : > { %v2726_v11 = vmax.f32 %v2694_v48, 0.0 }
 0x325   : > { %v2758_v38 = vpack.c.bf16 %v2726_v11, %v2726_v11 }
 0x327   : > { %2791 = vst.msk [vmem:[%s4345_s13 + $0x44] sm:$0xf] %vm2773_vm1, %v2758_v38 }
 0x32c   : > { %v2544_v58 = vpop.f32.mrf.mxu2 }
 0x32d   : > { %v2598_v0 = vmul.f32 %v4323_v53, %v2544_v58 }
 0x32f   : > { %v2631_v28 = vadd.f32 %v4329_v16, %v2598_v0  ;;  %v250_v0 = vld [vmem:[%s3243_s27 + $0x60] sm:$0xff]  }
 0x331   : > { %v2695_v7 = vadd.f32 %v2663_v43, %v2631_v28 }
 0x333   : > { %v2727_v3 = vmax.f32 %v2695_v7, 0.0 }
 0x334   : > { %v2546_v55 = vpop.f32.mrf.mxu2 }
 0x335   : > { %v2759_v61 = vpack.c.bf16 %v2727_v3, %v2727_v3  ;;  %v2599_v51 = vmul.f32 %v4323_v53, %v2546_v55  ;;  %v2669_v3 = vunpack.c.l.bf16 %v250_v0 }
 0x337   : > { %2792 = vst.msk [vmem:[%s4345_s13 + $0x48] sm:$0xf] %vm2773_vm1, %v2759_v61  ;;  %v2632_v54 = vadd.f32 %v4329_v16, %v2599_v51  ;;  %v2674_v61 = vunpack.c.h.bf16 %v254_v9 }
 0x339   : > { %v2696_v46 = vadd.f32 %v2664_v24, %v2632_v54 }
 0x33b   : > { %v2728_v39 = vmax.f32 %v2696_v46, 0.0 }
 0x33d   : > { %v2760_v52 = vpack.c.bf16 %v2728_v39, %v2728_v39  ;;  %v2549_v49 = vpop.f32.mrf.mxu2 }
 0x33e   : > { %v2600_v29 = vmul.f32 %v4323_v53, %v2549_v49 }
 0x33f   : > { %2793 = vst.msk [vmem:[%s4345_s13 + $0x4c] sm:$0xf] %vm2773_vm1, %v2760_v52 }
 0x340   : > { %v2633_v15 = vadd.f32 %v4329_v16, %v2600_v29 }
 0x342   : > { %v2697_v22 = vadd.f32 %v2665_v13, %v2633_v15 }
 0x344   : > { %v2729_v31 = vmax.f32 %v2697_v22, 0.0 }
 0x345   : > { %v2551_v57 = vpop.f32.mrf.mxu2 }
 0x346   : > { %v2761_v35 = vpack.c.bf16 %v2729_v31, %v2729_v31  ;;  %v2601_v17 = vmul.f32 %v4323_v53, %v2551_v57 }
 0x348   : > { %2794 = vst.msk [vmem:[%s4345_s13 + $0x50] sm:$0xf] %vm2773_vm1, %v2761_v35  ;;  %v2634_v47 = vadd.f32 %v4329_v16, %v2601_v17  ;;  %v2670_v35 = vunpack.c.h.bf16 %v250_v0 }
 0x34a   : > { %v2698_v2 = vadd.f32 %v2666_v8, %v2634_v47  ;;  %v256_v8 = vld [vmem:[%s3243_s27 + $0x78] sm:$0xff]  }
 0x34c   : > { %v2730_v59 = vmax.f32 %v2698_v2, 0.0 }
 0x34e   : > { %v2762_v19 = vpack.c.bf16 %v2730_v59, %v2730_v59 }
 0x350   : > { %2795 = vst.msk [vmem:[%s4345_s13 + $0x54] sm:$0xf] %vm2773_vm1, %v2762_v19  ;;  %v2675_v19 = vunpack.c.l.bf16 %v256_v8 }
 0x35f   : > { %v2564_v27 = vpop.f32.mrf.mxu3 }
 0x360   : > { %v2606_v37 = vmul.f32 %v4323_v53, %v2564_v27 }
 0x362   : > { %v2639_v36 = vadd.f32 %v4329_v16, %v2606_v37 }
 0x364   : > { %v2703_v18 = vadd.f32 %v2671_v20, %v2639_v36 }
 0x366   : > { %v2735_v4 = vmax.f32 %v2703_v18, 0.0 }
 0x367   : > { %v2554_v40 = vpop.f32.mrf.mxu2  ;;  %v2566_v62 = vpop.f32.mrf.mxu3 }
 0x368   : > { %v2767_v56 = vpack.c.bf16 %v2735_v4, %v2735_v4  ;;  %v2602_v6 = vmul.f32 %v4323_v53, %v2554_v40  ;;  %v2607_v63 = vmul.f32 %v4323_v53, %v2566_v62  ;;  %v2676_v40 = vunpack.c.h.bf16 %v256_v8 }
 0x36a   : > { %2800 = vst.msk [vmem:[%s4345_s13 + $0x68] sm:$0xf] %vm2773_vm1, %v2767_v56  ;;  %v2635_v60 = vadd.f32 %v4329_v16, %v2602_v6  ;;  %v2640_v25 = vadd.f32 %v4329_v16, %v2607_v63 }
 0x36c   : > { %v2699_v45 = vadd.f32 %v2667_v41, %v2635_v60  ;;  %v2704_v10 = vadd.f32 %v2672_v42, %v2640_v25 }
 0x36e   : > { %v2731_v26 = vmax.f32 %v2699_v45, 0.0  ;;  %v2736_v12 = vmax.f32 %v2704_v10, 0.0 }
 0x36f   : > { %v2556_v44 = vpop.f32.mrf.mxu2  ;;  %v2569_v21 = vpop.f32.mrf.mxu3 }
 0x370   : > { %v2763_v34 = vpack.c.bf16 %v2731_v26, %v2731_v26  ;;  %v2768_v32 = vpack.c.bf16 %v2736_v12, %v2736_v12  ;;  %v2603_v23 = vmul.f32 %v4323_v53, %v2556_v44  ;;  %v2608_v48 = vmul.f32 %v4323_v53, %v2569_v21 }
 0x372   : > { %2796 = vst.msk [vmem:[%s4345_s13 + $0x58] sm:$0xf] %vm2773_vm1, %v2763_v34  ;;  %v2636_v11 = vadd.f32 %v4329_v16, %v2603_v23  ;;  %v2641_v38 = vadd.f32 %v4329_v16, %v2608_v48 }
 0x373   : > { %2801 = vst.msk [vmem:[%s4345_s13 + $0x6c] sm:$0xf] %vm2773_vm1, %v2768_v32 }
 0x374   : > { %v2700_v30 = vadd.f32 %v2668_v1, %v2636_v11  ;;  %v2705_v58 = vadd.f32 %v2673_v5, %v2641_v38 }
 0x376   : > { %v2732_v43 = vmax.f32 %v2700_v30, 0.0  ;;  %v2737_v28 = vmax.f32 %v2705_v58, 0.0 }
 0x377   : > { %v2559_v7 = vpop.f32.mrf.mxu2  ;;  %v2571_v55 = vpop.f32.mrf.mxu3 }
 0x378   : > { %v2764_v51 = vpack.c.bf16 %v2732_v43, %v2732_v43  ;;  %v2769_v24 = vpack.c.bf16 %v2737_v28, %v2737_v28  ;;  %v2604_v54 = vmul.f32 %v4323_v53, %v2559_v7  ;;  %v2609_v46 = vmul.f32 %v4323_v53, %v2571_v55 }
 0x37a   : > { %2797 = vst.msk [vmem:[%s4345_s13 + $0x5c] sm:$0xf] %vm2773_vm1, %v2764_v51  ;;  %v2637_v39 = vadd.f32 %v4329_v16, %v2604_v54  ;;  %v2642_v50 = vadd.f32 %v4329_v16, %v2609_v46 }
 0x37b   : > { %2802 = vst.msk [vmem:[%s4345_s13 + $0x70] sm:$0xf] %vm2773_vm1, %v2769_v24 }
 0x37c   : > { %v2701_v52 = vadd.f32 %v2669_v3, %v2637_v39  ;;  %v2706_v49 = vadd.f32 %v2674_v61, %v2642_v50 }
 0x37e   : > { %v2733_v29 = vmax.f32 %v2701_v52, 0.0  ;;  %v2738_v13 = vmax.f32 %v2706_v49, 0.0 }
 0x37f   : > { %v2561_v15 = vpop.f32.mrf.mxu2 }
 0x380   : > { %v2765_v22 = vpack.c.bf16 %v2733_v29, %v2733_v29  ;;  %v2770_v31 = vpack.c.bf16 %v2738_v13, %v2738_v13  ;;  %v2605_v57 = vmul.f32 %v4323_v53, %v2561_v15 }
 0x382   : > { %2798 = vst.msk [vmem:[%s4345_s13 + $0x60] sm:$0xf] %vm2773_vm1, %v2765_v22  ;;  %v2638_v17 = vadd.f32 %v4329_v16, %v2605_v57 }
 0x383   : > { %2803 = vst.msk [vmem:[%s4345_s13 + $0x74] sm:$0xf] %vm2773_vm1, %v2770_v31 }
 0x384   : > { %v2702_v47 = vadd.f32 %v2670_v35, %v2638_v17  ;;  %v2574_v2 = vpop.f32.mrf.mxu3 }
 0x385   : > { %v2610_v59 = vmul.f32 %v4323_v53, %v2574_v2 }
 0x386   : > { %v2734_v33 = vmax.f32 %v2702_v47, 0.0 }
 0x387   : > { %v2643_v27 = vadd.f32 %v4329_v16, %v2610_v59 }
 0x388   : > { %v2766_v37 = vpack.c.bf16 %v2734_v33, %v2734_v33 }
 0x389   : > { %v2707_v20 = vadd.f32 %v2675_v19, %v2643_v27 }
 0x38a   : > { %2799 = vst.msk [vmem:[%s4345_s13 + $0x64] sm:$0xf] %vm2773_vm1, %v2766_v37 }
 0x38b   : > { %v2739_v36 = vmax.f32 %v2707_v20, 0.0 }
 0x38c   : > { %v2576_v18 = vpop.f32.mrf.mxu3 }
 0x38d   : > { %v2771_v14 = vpack.c.bf16 %v2739_v36, %v2739_v36  ;;  %v2611_v4 = vmul.f32 %v4323_v53, %v2576_v18 }
 0x38f   : > { %2804 = vst.msk [vmem:[%s4345_s13 + $0x78] sm:$0xf] %vm2773_vm1, %v2771_v14  ;;  %v2644_v41 = vadd.f32 %v4329_v16, %v2611_v4 }
 0x391   : > { %v2708_v62 = vadd.f32 %v2676_v40, %v2644_v41 }
 0x393   : > { %v2740_v56 = vmax.f32 %v2708_v62, 0.0 }
 0x395   : > { %v2772_v6 = vpack.c.bf16 %v2740_v56, %v2740_v56 }
 0x397   : > { %2805 = vst.msk [vmem:[%s4345_s13 + $0x7c] sm:$0xf] %vm2773_vm1, %v2772_v6 }
 0x398 PF: > { %s15_s18 = sadd.s32 1, %s3180_s18  }
 0x399   : > { %p12_p4 = scmp.ge.s32.totalorder %s15_s18, 4  }
 0x39b   :  { %14 = sbr.rel (!%p12_p4) target bundleno = 1 (0x1), region = 72 }

</bundles_post_ra>
